<compile_context>
chip_gen: v7x
topology: tpu7x:2x2x1
jax: 0.10.0
libtpu: 0.0.40
codegen_flags: <defaults>
</compile_context>

<pallas_src>
import math

import numpy as np
import jax
import jax.numpy as jnp
from jax.experimental import pallas as pl
from jax.experimental.pallas import tpu as pltpu


# ----------------------------------------------------------------------------
# exact GELU as written in the torch forward: y = (v*0.5) * (erf(v/sqrt(2)) + 1)
# erf via Abramowitz & Stegun 7.1.26 (|err| < 1.5e-7).
# TODO(synk): replace with lax.erf if Mosaic ever exposes a native erf lowering.
# ----------------------------------------------------------------------------
def _gelu_exact(v):
    x = v * 0.7071067811865476
    sgn = jnp.where(x >= 0.0, 1.0, -1.0)
    ax = jnp.abs(x)
    d = 1.0 + 0.3275911 * ax
    t = pl.reciprocal(d, approx=True)      # EUP slot
    t = t * (2.0 - d * t)                  # one Newton step -> ~exact 1/d
    poly = ((((1.061405429 * t - 1.453152027) * t + 1.421413741) * t
             - 0.284496736) * t + 0.254829592) * t
    erf = sgn * (1.0 - poly * jnp.exp(-ax * ax))
    return (v * 0.5) * (erf + 1.0)


# ----------------------------------------------------------------------------
# Fused forward kernel.
#
# Layout: activations are (rows, 256) f32; lanes = y*16 + x on the 16x16 grid,
# sublanes = channels (stage 1) or 4 phases x 8 channels (stages 2/3).
#
#   x_ref     (8, 256)      input image broadcast to all 8 sublane rows
#   mw1_ref   (9, 8, 256)   per-tap stage-1 weight * validity mask
#   b1_ref    (8, 1)        stage-1 bias (rows >=5 zero)
#   masks_ref (9, 32, 256)  0/1 validity mask per (dy,dx) offset in {-1,0,1}^2
#   w2_ref    (32, 32)      polyphase ConvT weights  [8*q+o, 8*j+i]
#   b2_ref    (32, 1)
#   w3_ref    (32, 288)     polyphase 5x5 conv weights [8*q+o, 32*d+8*p+c]
#   b3_ref    (32, 1)
#   o_ref     (32, 256)     4 output phases x 8 channels (rows 6,7 per phase 0)
#   s2_ref    (32, 256)     scratch: K-stack for stage 2
#   s3_ref    (288, 256)    scratch: K-stack for stage 3
# ----------------------------------------------------------------------------
def _fused_forward_kernel(x_ref, mw1_ref, b1_ref, masks_ref,
                          w2_ref, b2_ref, w3_ref, b3_ref,
                          o_ref, s2_ref, s3_ref):
    # ---- Stage 1: Conv2d(1,5,3,p=1) + GELU (single input channel -> VPU) ----
    x8 = x_ref[...]                                   # (8, 256)
    acc1 = x8 * mw1_ref[4]                            # center tap, no shift
    for t in range(9):
        if t == 4:
            continue
        s = (t // 3 - 1) * 16 + (t % 3 - 1)
        rolled = pltpu.roll(x8, shift=(-s) % 256, axis=1)
        acc1 = acc1 + rolled * mw1_ref[t]
    a1 = _gelu_exact(acc1 + b1_ref[...])              # (8, 256), rows >=5 == 0

    # ---- Stage 2: polyphase ConvTranspose2d(5,8,3,s=2,p=1,op=1) + GELU ------
    # Stack the 4 needed (dy,dx) in {0,1}^2 shifts along K and do ONE matmul.
    s2_ref[0:8, :] = a1                                         # delta (0,0)
    for j, (dy, dx, d) in enumerate([(0, 1, 5), (1, 0, 7), (1, 1, 8)], start=1):
        s = dy * 16 + dx
        rolled = pltpu.roll(a1, shift=(-s) % 256, axis=1)
        s2_ref[8 * j:8 * j + 8, :] = rolled * masks_ref[d, 0:8, :]
    v2 = jnp.dot(w2_ref[...], s2_ref[...],
                 preferred_element_type=jnp.float32) + b2_ref[...]
    a2 = _gelu_exact(v2)                              # (32, 256): 4 phases x 8ch

    # ---- Stage 3: Conv2d(8,6,5,p=2), kept in the polyphase domain -----------
    # 9 shifted/masked copies of the whole 4-phase block -> one K=288 matmul.
    for d in range(9):
        dy, dx = d // 3 - 1, d % 3 - 1
        if d == 4:
            blk = a2
        else:
            s = dy * 16 + dx
            rolled = pltpu.roll(a2, shift=(-s) % 256, axis=1)
            blk = rolled * masks_ref[d]
        s3_ref[32 * d:32 * d + 32, :] = blk
    o_ref[...] = jnp.dot(w3_ref[...], s3_ref[...],
                         preferred_element_type=jnp.float32) + b3_ref[...]


# ----------------------------------------------------------------------------
# Parameters: PyTorch-style init + one-time re-packing into kernel layout.
# ----------------------------------------------------------------------------
def init_params(key):
    ks = jax.random.split(key, 6)

    def u(k, shape, fan_in):
        bound = 1.0 / math.sqrt(fan_in)
        return jax.random.uniform(k, shape, jnp.float32, -bound, bound)

    return {
        "w1": u(ks[0], (5, 1, 3, 3), 1 * 3 * 3),   # Conv2d(1,5,3)   OIHW
        "b1": u(ks[1], (5,), 1 * 3 * 3),
        "w2": u(ks[2], (5, 8, 3, 3), 8 * 3 * 3),   # ConvTranspose2d IOHW
        "b2": u(ks[3], (8,), 8 * 3 * 3),
        "w3": u(ks[4], (6, 8, 5, 5), 8 * 5 * 5),   # Conv2d(8,6,5)   OIHW
        "b3": u(ks[5], (6,), 8 * 5 * 5),
    }


def prepare_params(params):
    """One-time host-side re-pack: tap masks, stage-1 mask*weight constants and
    the polyphase weight matrices for stages 2/3."""
    w1 = np.asarray(params["w1"]); b1 = np.asarray(params["b1"])
    w2 = np.asarray(params["w2"]); b2 = np.asarray(params["b2"])
    w3 = np.asarray(params["w3"]); b3 = np.asarray(params["b3"])

    lane = np.arange(256)
    xi, yi = lane % 16, lane // 16

    def mask_for(dy, dx):                      # validity of (y+dy, x+dx) on 16x16
        return (((xi + dx) >= 0) & ((xi + dx) < 16) &
                ((yi + dy) >= 0) & ((yi + dy) < 16)).astype(np.float32)

    # --- Stage 1: per-tap (weight column x validity mask), channels padded to 8
    mw1 = np.zeros((9, 8, 256), np.float32)
    for t in range(9):
        dy, dx = t // 3 - 1, t % 3 - 1
        mw1[t, :5, :] = w1[:, 0, t // 3, t % 3][:, None] * mask_for(dy, dx)[None, :]
    b1p = np.zeros((8, 1), np.float32)
    b1p[:5, 0] = b1

    # --- Shared tap-validity masks for offsets (dy,dx) in {-1,0,1}^2 ---------
    masks = np.stack([np.broadcast_to(mask_for(d // 3 - 1, d % 3 - 1), (32, 256))
                      for d in range(9)]).astype(np.float32)

    # --- Stage 2: polyphase ConvT weights.  Output phase q=(qY,qX), tap block j
    #     over input offsets (0,0),(0,1),(1,0),(1,1); kernel index ky = qY-2*dy+1.
    deltas2 = [(0, 0), (0, 1), (1, 0), (1, 1)]
    W2 = np.zeros((32, 32), np.float32)
    for qidx in range(4):
        qY, qX = qidx // 2, qidx % 2
        for j, (dly, dlx) in enumerate(deltas2):
            ky, kx = qY - 2 * dly + 1, qX - 2 * dlx + 1
            if 0 <= ky < 3 and 0 <= kx < 3:
                W2[8 * qidx:8 * qidx + 8, 8 * j:8 * j + 5] = w2[:, :, ky, kx].T
    b2p = np.tile(b2, 4).reshape(32, 1).astype(np.float32)

    # --- Stage 3: polyphase 5x5 conv weights.  Columns indexed by
    #     (offset d, input phase p, channel c); tap dy = 2*dly + pY - qY.
    W3 = np.zeros((32, 288), np.float32)
    for qidx in range(4):
        qY, qX = qidx // 2, qidx % 2
        for d in range(9):
            dly, dlx = d // 3 - 1, d % 3 - 1
            for pidx in range(4):
                pY, pX = pidx // 2, pidx % 2
                dy, dx = 2 * dly + pY - qY, 2 * dlx + pX - qX
                if -2 <= dy <= 2 and -2 <= dx <= 2:
                    W3[8 * qidx:8 * qidx + 6,
                       32 * d + 8 * pidx:32 * d + 8 * pidx + 8] = w3[:, :, dy + 2, dx + 2]
    b3p = np.zeros((32, 1), np.float32)
    for qidx in range(4):
        b3p[8 * qidx:8 * qidx + 6, 0] = b3

    packed = dict(mw1=mw1, b1=b1p, masks=masks, w2=W2, b2=b2p, w3=W3, b3=b3p)
    return {k: jnp.asarray(v) for k, v in packed.items()}


# ----------------------------------------------------------------------------
# Forward pass (mirrors Model.forward).
# ----------------------------------------------------------------------------
@jax.jit
def forward(x_nchw, prep):
    assert x_nchw.shape == (1, 1, 16, 16), "synthetic module uses (1,1,16,16)"
    x_flat = x_nchw.reshape(1, 256).astype(jnp.float32)
    x8 = jnp.broadcast_to(x_flat, (8, 256))
    out32 = pl.pallas_call(
        _fused_forward_kernel,
        out_shape=jax.ShapeDtypeStruct((32, 256), jnp.float32),
        in_specs=[pl.BlockSpec(memory_space=pltpu.MemorySpace.VMEM)] * 8,
        out_specs=pl.BlockSpec(memory_space=pltpu.MemorySpace.VMEM),
        scratch_shapes=[pltpu.VMEM((32, 256), jnp.float32),
                        pltpu.VMEM((288, 256), jnp.float32)],
    )(x8, prep["mw1"], prep["b1"], prep["masks"],
      prep["w2"], prep["b2"], prep["w3"], prep["b3"])
    # Un-interleave the 4 sub-pixel phases: row 8*(2*qY+qX)+o, lane 16*y'+x'
    # maps to output pixel (o, 2*y'+qY, 2*x'+qX).
    out = out32.reshape(2, 2, 8, 16, 16)          # (qY, qX, o, y', x')
    out = jnp.transpose(out, (2, 3, 0, 4, 1))     # (o, y', qY, x', qX)
    out = out.reshape(8, 32, 32)[:6]
    return out[None]                              # (1, 6, 32, 32)


# ----------------------------------------------------------------------------
# Pure-JAX (XLA) reference for a correctness cross-check.
# ----------------------------------------------------------------------------
def _reference(x, params):
    dn = ("NCHW", "OIHW", "NCHW")

    def gelu(v):
        return (v * 0.5) * (jax.scipy.special.erf(v * 0.7071067811865476) + 1.0)

    v1 = jax.lax.conv_general_dilated(x, params["w1"], (1, 1),
                                      ((1, 1), (1, 1)), dimension_numbers=dn)
    v6 = gelu(v1 + params["b1"][None, :, None, None])
    w2 = jnp.transpose(params["w2"][:, :, ::-1, ::-1], (1, 0, 2, 3))
    v7 = jax.lax.conv_general_dilated(v6, w2, (1, 1), ((1, 2), (1, 2)),
                                      lhs_dilation=(2, 2), dimension_numbers=dn)
    v12 = gelu(v7 + params["b2"][None, :, None, None])
    v13 = jax.lax.conv_general_dilated(v12, params["w3"], (1, 1),
                                       ((2, 2), (2, 2)), dimension_numbers=dn)
    return v13 + params["b3"][None, :, None, None]


if __name__ == "__main__":
    key = jax.random.PRNGKey(0)
    kx, kp = jax.random.split(key)
    x1 = jax.random.normal(kx, (1, 1, 16, 16), dtype=jnp.float32)
    params = init_params(kp)
    prep = prepare_params(params)

    out = jax.block_until_ready(forward(x1, prep))
    assert out.shape == (1, 6, 32, 32), out.shape

    ref = jax.block_until_ready(_reference(x1, params))
    assert jnp.allclose(out, ref, atol=2e-3, rtol=2e-3), \
        float(jnp.max(jnp.abs(out - ref)))

    print("KERNEL_OK")
</pallas_src>

<mosaic_0001>
module attributes {stable_mosaic.version = 11 : i64} {
  func.func @_fused_forward_kernel(%arg0: memref<8x256xf32, #tpu.memory_space<vmem>>, %arg1: memref<9x8x256xf32, #tpu.memory_space<vmem>>, %arg2: memref<8x1xf32, #tpu.memory_space<vmem>>, %arg3: memref<9x32x256xf32, #tpu.memory_space<vmem>>, %arg4: memref<32x32xf32, #tpu.memory_space<vmem>>, %arg5: memref<32x1xf32, #tpu.memory_space<vmem>>, %arg6: memref<32x288xf32, #tpu.memory_space<vmem>>, %arg7: memref<32x1xf32, #tpu.memory_space<vmem>>, %arg8: memref<32x256xf32, #tpu.memory_space<vmem>>, %arg9: memref<32x256xf32, #tpu.memory_space<vmem>>, %arg10: memref<288x256xf32, #tpu.memory_space<vmem>>) attributes {dimension_semantics = [], scalar_prefetch = 0 : i64, scratch_operands = 2 : i64, tpu.core_type = #tpu.core_type<tc>} {
    %c0 = arith.constant 0 : index
    %c0_0 = arith.constant 0 : index
    %0 = vector.load %arg0[%c0, %c0_0] : memref<8x256xf32, #tpu.memory_space<vmem>>, vector<8x256xf32>
    %c4 = arith.constant 4 : index
    %c0_1 = arith.constant 0 : index
    %c0_2 = arith.constant 0 : index
    %1 = vector.load %arg1[%c4, %c0_1, %c0_2] : memref<9x8x256xf32, #tpu.memory_space<vmem>>, vector<1x8x256xf32>
    %2 = vector.shape_cast %1 : vector<1x8x256xf32> to vector<8x256xf32>
    %3 = arith.mulf %0, %2 : vector<8x256xf32>
    %c17_i32 = arith.constant 17 : i32
    %4 = tpu.dynamic_rotate %0 by %c17_i32 dim 1 : vector<8x256xf32>, i32 -> vector<8x256xf32>
    %c0_3 = arith.constant 0 : index
    %c0_4 = arith.constant 0 : index
    %c0_5 = arith.constant 0 : index
    %5 = vector.load %arg1[%c0_3, %c0_4, %c0_5] : memref<9x8x256xf32, #tpu.memory_space<vmem>>, vector<1x8x256xf32>
    %6 = vector.shape_cast %5 : vector<1x8x256xf32> to vector<8x256xf32>
    %7 = arith.mulf %4, %6 : vector<8x256xf32>
    %8 = arith.addf %3, %7 : vector<8x256xf32>
    %c16_i32 = arith.constant 16 : i32
    %9 = tpu.dynamic_rotate %0 by %c16_i32 dim 1 : vector<8x256xf32>, i32 -> vector<8x256xf32>
    %c1 = arith.constant 1 : index
    %c0_6 = arith.constant 0 : index
    %c0_7 = arith.constant 0 : index
    %10 = vector.load %arg1[%c1, %c0_6, %c0_7] : memref<9x8x256xf32, #tpu.memory_space<vmem>>, vector<1x8x256xf32>
    %11 = vector.shape_cast %10 : vector<1x8x256xf32> to vector<8x256xf32>
    %12 = arith.mulf %9, %11 : vector<8x256xf32>
    %13 = arith.addf %8, %12 : vector<8x256xf32>
    %c15_i32 = arith.constant 15 : i32
    %14 = tpu.dynamic_rotate %0 by %c15_i32 dim 1 : vector<8x256xf32>, i32 -> vector<8x256xf32>
    %c2 = arith.constant 2 : index
    %c0_8 = arith.constant 0 : index
    %c0_9 = arith.constant 0 : index
    %15 = vector.load %arg1[%c2, %c0_8, %c0_9] : memref<9x8x256xf32, #tpu.memory_space<vmem>>, vector<1x8x256xf32>
    %16 = vector.shape_cast %15 : vector<1x8x256xf32> to vector<8x256xf32>
    %17 = arith.mulf %14, %16 : vector<8x256xf32>
    %18 = arith.addf %13, %17 : vector<8x256xf32>
    %c1_i32 = arith.constant 1 : i32
    %19 = tpu.dynamic_rotate %0 by %c1_i32 dim 1 : vector<8x256xf32>, i32 -> vector<8x256xf32>
    %c3 = arith.constant 3 : index
    %c0_10 = arith.constant 0 : index
    %c0_11 = arith.constant 0 : index
    %20 = vector.load %arg1[%c3, %c0_10, %c0_11] : memref<9x8x256xf32, #tpu.memory_space<vmem>>, vector<1x8x256xf32>
    %21 = vector.shape_cast %20 : vector<1x8x256xf32> to vector<8x256xf32>
    %22 = arith.mulf %19, %21 : vector<8x256xf32>
    %23 = arith.addf %18, %22 : vector<8x256xf32>
    %c255_i32 = arith.constant 255 : i32
    %24 = tpu.dynamic_rotate %0 by %c255_i32 dim 1 : vector<8x256xf32>, i32 -> vector<8x256xf32>
    %c5 = arith.constant 5 : index
    %c0_12 = arith.constant 0 : index
    %c0_13 = arith.constant 0 : index
    %25 = vector.load %arg1[%c5, %c0_12, %c0_13] : memref<9x8x256xf32, #tpu.memory_space<vmem>>, vector<1x8x256xf32>
    %26 = vector.shape_cast %25 : vector<1x8x256xf32> to vector<8x256xf32>
    %27 = arith.mulf %24, %26 : vector<8x256xf32>
    %28 = arith.addf %23, %27 : vector<8x256xf32>
    %c241_i32 = arith.constant 241 : i32
    %29 = tpu.dynamic_rotate %0 by %c241_i32 dim 1 : vector<8x256xf32>, i32 -> vector<8x256xf32>
    %c6 = arith.constant 6 : index
    %c0_14 = arith.constant 0 : index
    %c0_15 = arith.constant 0 : index
    %30 = vector.load %arg1[%c6, %c0_14, %c0_15] : memref<9x8x256xf32, #tpu.memory_space<vmem>>, vector<1x8x256xf32>
    %31 = vector.shape_cast %30 : vector<1x8x256xf32> to vector<8x256xf32>
    %32 = arith.mulf %29, %31 : vector<8x256xf32>
    %33 = arith.addf %28, %32 : vector<8x256xf32>
    %c240_i32 = arith.constant 240 : i32
    %34 = tpu.dynamic_rotate %0 by %c240_i32 dim 1 : vector<8x256xf32>, i32 -> vector<8x256xf32>
    %c7 = arith.constant 7 : index
    %c0_16 = arith.constant 0 : index
    %c0_17 = arith.constant 0 : index
    %35 = vector.load %arg1[%c7, %c0_16, %c0_17] : memref<9x8x256xf32, #tpu.memory_space<vmem>>, vector<1x8x256xf32>
    %36 = vector.shape_cast %35 : vector<1x8x256xf32> to vector<8x256xf32>
    %37 = arith.mulf %34, %36 : vector<8x256xf32>
    %38 = arith.addf %33, %37 : vector<8x256xf32>
    %c239_i32 = arith.constant 239 : i32
    %39 = tpu.dynamic_rotate %0 by %c239_i32 dim 1 : vector<8x256xf32>, i32 -> vector<8x256xf32>
    %c8 = arith.constant 8 : index
    %c0_18 = arith.constant 0 : index
    %c0_19 = arith.constant 0 : index
    %40 = vector.load %arg1[%c8, %c0_18, %c0_19] : memref<9x8x256xf32, #tpu.memory_space<vmem>>, vector<1x8x256xf32>
    %41 = vector.shape_cast %40 : vector<1x8x256xf32> to vector<8x256xf32>
    %42 = arith.mulf %39, %41 : vector<8x256xf32>
    %43 = arith.addf %38, %42 : vector<8x256xf32>
    %c0_20 = arith.constant 0 : index
    %c0_21 = arith.constant 0 : index
    %44 = vector.load %arg2[%c0_20, %c0_21] : memref<8x1xf32, #tpu.memory_space<vmem>>, vector<8x1xf32>
    %45 = vector.broadcast %44 : vector<8x1xf32> to vector<8x256xf32>
    %46 = arith.addf %43, %45 : vector<8x256xf32>
    %cst = arith.constant 0.707106769 : f32
    %47 = vector.broadcast %cst : f32 to vector<8x256xf32>
    %48 = arith.mulf %46, %47 : vector<8x256xf32>
    %cst_22 = arith.constant 0.000000e+00 : f32
    %49 = vector.broadcast %cst_22 : f32 to vector<8x256xf32>
    %50 = arith.cmpf oge, %48, %49 : vector<8x256xf32>
    %cst_23 = arith.constant 1.000000e+00 : f32
    %cst_24 = arith.constant -1.000000e+00 : f32
    %51 = vector.broadcast %cst_23 : f32 to vector<8x256xf32>
    %52 = vector.broadcast %cst_24 : f32 to vector<8x256xf32>
    %53 = arith.select %50, %51, %52 : vector<8x256xi1>, vector<8x256xf32>
    %54 = math.absf %48 : vector<8x256xf32>
    %cst_25 = arith.constant 0.327591091 : f32
    %55 = vector.broadcast %cst_25 : f32 to vector<8x256xf32>
    %56 = arith.mulf %55, %54 : vector<8x256xf32>
    %cst_26 = arith.constant 1.000000e+00 : f32
    %57 = vector.broadcast %cst_26 : f32 to vector<8x256xf32>
    %58 = arith.addf %57, %56 : vector<8x256xf32>
    %59 = tpu.reciprocal %58 {approx = true} : vector<8x256xf32> -> vector<8x256xf32>
    %60 = arith.mulf %58, %59 : vector<8x256xf32>
    %cst_27 = arith.constant 2.000000e+00 : f32
    %61 = vector.broadcast %cst_27 : f32 to vector<8x256xf32>
    %62 = arith.subf %61, %60 : vector<8x256xf32>
    %63 = arith.mulf %59, %62 : vector<8x256xf32>
    %cst_28 = arith.constant 1.06140542 : f32
    %64 = vector.broadcast %cst_28 : f32 to vector<8x256xf32>
    %65 = arith.mulf %64, %63 : vector<8x256xf32>
    %cst_29 = arith.constant 1.45315206 : f32
    %66 = vector.broadcast %cst_29 : f32 to vector<8x256xf32>
    %67 = arith.subf %65, %66 : vector<8x256xf32>
    %68 = arith.mulf %67, %63 : vector<8x256xf32>
    %cst_30 = arith.constant 1.42141378 : f32
    %69 = vector.broadcast %cst_30 : f32 to vector<8x256xf32>
    %70 = arith.addf %68, %69 : vector<8x256xf32>
    %71 = arith.mulf %70, %63 : vector<8x256xf32>
    %cst_31 = arith.constant 0.284496725 : f32
    %72 = vector.broadcast %cst_31 : f32 to vector<8x256xf32>
    %73 = arith.subf %71, %72 : vector<8x256xf32>
    %74 = arith.mulf %73, %63 : vector<8x256xf32>
    %cst_32 = arith.constant 0.254829586 : f32
    %75 = vector.broadcast %cst_32 : f32 to vector<8x256xf32>
    %76 = arith.addf %74, %75 : vector<8x256xf32>
    %77 = arith.mulf %76, %63 : vector<8x256xf32>
    %cst_33 = arith.constant 0.000000e+00 : f32
    %78 = vector.broadcast %cst_33 : f32 to vector<8x256xf32>
    %79 = arith.subf %78, %54 : vector<8x256xf32>
    %80 = arith.mulf %79, %54 : vector<8x256xf32>
    %81 = math.exp %80 : vector<8x256xf32>
    %82 = arith.mulf %77, %81 : vector<8x256xf32>
    %cst_34 = arith.constant 1.000000e+00 : f32
    %83 = vector.broadcast %cst_34 : f32 to vector<8x256xf32>
    %84 = arith.subf %83, %82 : vector<8x256xf32>
    %85 = arith.mulf %53, %84 : vector<8x256xf32>
    %cst_35 = arith.constant 5.000000e-01 : f32
    %86 = vector.broadcast %cst_35 : f32 to vector<8x256xf32>
    %87 = arith.mulf %46, %86 : vector<8x256xf32>
    %cst_36 = arith.constant 1.000000e+00 : f32
    %88 = vector.broadcast %cst_36 : f32 to vector<8x256xf32>
    %89 = arith.addf %85, %88 : vector<8x256xf32>
    %90 = arith.mulf %87, %89 : vector<8x256xf32>
    %c0_37 = arith.constant 0 : index
    %c0_38 = arith.constant 0 : index
    %91 = vector.load %arg9[%c0_37, %c0_38] : memref<32x256xf32, #tpu.memory_space<vmem>>, vector<8x256xf32>
    tpu.vector_store %arg9[%c0_37, %c0_38], %90 {strides = array<i32>} : memref<32x256xf32, #tpu.memory_space<vmem>>, vector<8x256xf32>,
    %c255_i32_39 = arith.constant 255 : i32
    %92 = tpu.dynamic_rotate %90 by %c255_i32_39 dim 1 : vector<8x256xf32>, i32 -> vector<8x256xf32>
    %c5_40 = arith.constant 5 : index
    %c0_41 = arith.constant 0 : index
    %c0_42 = arith.constant 0 : index
    %93 = vector.load %arg3[%c5_40, %c0_41, %c0_42] : memref<9x32x256xf32, #tpu.memory_space<vmem>>, vector<1x8x256xf32>
    %94 = vector.shape_cast %93 : vector<1x8x256xf32> to vector<8x256xf32>
    %95 = arith.mulf %92, %94 : vector<8x256xf32>
    %c8_43 = arith.constant 8 : index
    %c0_44 = arith.constant 0 : index
    %96 = vector.load %arg9[%c8_43, %c0_44] : memref<32x256xf32, #tpu.memory_space<vmem>>, vector<8x256xf32>
    tpu.vector_store %arg9[%c8_43, %c0_44], %95 {strides = array<i32>} : memref<32x256xf32, #tpu.memory_space<vmem>>, vector<8x256xf32>,
    %c240_i32_45 = arith.constant 240 : i32
    %97 = tpu.dynamic_rotate %90 by %c240_i32_45 dim 1 : vector<8x256xf32>, i32 -> vector<8x256xf32>
    %c7_46 = arith.constant 7 : index
    %c0_47 = arith.constant 0 : index
    %c0_48 = arith.constant 0 : index
    %98 = vector.load %arg3[%c7_46, %c0_47, %c0_48] : memref<9x32x256xf32, #tpu.memory_space<vmem>>, vector<1x8x256xf32>
    %99 = vector.shape_cast %98 : vector<1x8x256xf32> to vector<8x256xf32>
    %100 = arith.mulf %97, %99 : vector<8x256xf32>
    %c16 = arith.constant 16 : index
    %c0_49 = arith.constant 0 : index
    %101 = vector.load %arg9[%c16, %c0_49] : memref<32x256xf32, #tpu.memory_space<vmem>>, vector<8x256xf32>
    tpu.vector_store %arg9[%c16, %c0_49], %100 {strides = array<i32>} : memref<32x256xf32, #tpu.memory_space<vmem>>, vector<8x256xf32>,
    %c239_i32_50 = arith.constant 239 : i32
    %102 = tpu.dynamic_rotate %90 by %c239_i32_50 dim 1 : vector<8x256xf32>, i32 -> vector<8x256xf32>
    %c8_51 = arith.constant 8 : index
    %c0_52 = arith.constant 0 : index
    %c0_53 = arith.constant 0 : index
    %103 = vector.load %arg3[%c8_51, %c0_52, %c0_53] : memref<9x32x256xf32, #tpu.memory_space<vmem>>, vector<1x8x256xf32>
    %104 = vector.shape_cast %103 : vector<1x8x256xf32> to vector<8x256xf32>
    %105 = arith.mulf %102, %104 : vector<8x256xf32>
    %c24 = arith.constant 24 : index
    %c0_54 = arith.constant 0 : index
    %106 = vector.load %arg9[%c24, %c0_54] : memref<32x256xf32, #tpu.memory_space<vmem>>, vector<8x256xf32>
    tpu.vector_store %arg9[%c24, %c0_54], %105 {strides = array<i32>} : memref<32x256xf32, #tpu.memory_space<vmem>>, vector<8x256xf32>,
    %c0_55 = arith.constant 0 : index
    %c0_56 = arith.constant 0 : index
    %107 = vector.load %arg4[%c0_55, %c0_56] : memref<32x32xf32, #tpu.memory_space<vmem>>, vector<32x32xf32>
    %c0_57 = arith.constant 0 : index
    %c0_58 = arith.constant 0 : index
    %108 = vector.load %arg9[%c0_57, %c0_58] : memref<32x256xf32, #tpu.memory_space<vmem>>, vector<32x256xf32>
    %cst_59 = arith.constant dense<0.000000e+00> : vector<32x256xf32>
    %109 = tpu.matmul %107, %108, %cst_59 {dimension_numbers = #tpu.dot_dimension_numbers<[1], [0], [0], [1], [0, 0, 1, 1], [], []>} : vector<32x32xf32>, vector<32x256xf32>, vector<32x256xf32> -> vector<32x256xf32>
    %c0_60 = arith.constant 0 : index
    %c0_61 = arith.constant 0 : index
    %110 = vector.load %arg5[%c0_60, %c0_61] : memref<32x1xf32, #tpu.memory_space<vmem>>, vector<32x1xf32>
    %111 = vector.broadcast %110 : vector<32x1xf32> to vector<32x256xf32>
    %112 = arith.addf %109, %111 : vector<32x256xf32>
    %cst_62 = arith.constant 0.707106769 : f32
    %113 = vector.broadcast %cst_62 : f32 to vector<32x256xf32>
    %114 = arith.mulf %112, %113 : vector<32x256xf32>
    %cst_63 = arith.constant 0.000000e+00 : f32
    %115 = vector.broadcast %cst_63 : f32 to vector<32x256xf32>
    %116 = arith.cmpf oge, %114, %115 : vector<32x256xf32>
    %cst_64 = arith.constant 1.000000e+00 : f32
    %cst_65 = arith.constant -1.000000e+00 : f32
    %117 = vector.broadcast %cst_64 : f32 to vector<32x256xf32>
    %118 = vector.broadcast %cst_65 : f32 to vector<32x256xf32>
    %119 = arith.select %116, %117, %118 : vector<32x256xi1>, vector<32x256xf32>
    %120 = math.absf %114 : vector<32x256xf32>
    %cst_66 = arith.constant 0.327591091 : f32
    %121 = vector.broadcast %cst_66 : f32 to vector<32x256xf32>
    %122 = arith.mulf %121, %120 : vector<32x256xf32>
    %cst_67 = arith.constant 1.000000e+00 : f32
    %123 = vector.broadcast %cst_67 : f32 to vector<32x256xf32>
    %124 = arith.addf %123, %122 : vector<32x256xf32>
    %125 = tpu.reciprocal %124 {approx = true} : vector<32x256xf32> -> vector<32x256xf32>
    %126 = arith.mulf %124, %125 : vector<32x256xf32>
    %cst_68 = arith.constant 2.000000e+00 : f32
    %127 = vector.broadcast %cst_68 : f32 to vector<32x256xf32>
    %128 = arith.subf %127, %126 : vector<32x256xf32>
    %129 = arith.mulf %125, %128 : vector<32x256xf32>
    %cst_69 = arith.constant 1.06140542 : f32
    %130 = vector.broadcast %cst_69 : f32 to vector<32x256xf32>
    %131 = arith.mulf %130, %129 : vector<32x256xf32>
    %cst_70 = arith.constant 1.45315206 : f32
    %132 = vector.broadcast %cst_70 : f32 to vector<32x256xf32>
    %133 = arith.subf %131, %132 : vector<32x256xf32>
    %134 = arith.mulf %133, %129 : vector<32x256xf32>
    %cst_71 = arith.constant 1.42141378 : f32
    %135 = vector.broadcast %cst_71 : f32 to vector<32x256xf32>
    %136 = arith.addf %134, %135 : vector<32x256xf32>
    %137 = arith.mulf %136, %129 : vector<32x256xf32>
    %cst_72 = arith.constant 0.284496725 : f32
    %138 = vector.broadcast %cst_72 : f32 to vector<32x256xf32>
    %139 = arith.subf %137, %138 : vector<32x256xf32>
    %140 = arith.mulf %139, %129 : vector<32x256xf32>
    %cst_73 = arith.constant 0.254829586 : f32
    %141 = vector.broadcast %cst_73 : f32 to vector<32x256xf32>
    %142 = arith.addf %140, %141 : vector<32x256xf32>
    %143 = arith.mulf %142, %129 : vector<32x256xf32>
    %cst_74 = arith.constant 0.000000e+00 : f32
    %144 = vector.broadcast %cst_74 : f32 to vector<32x256xf32>
    %145 = arith.subf %144, %120 : vector<32x256xf32>
    %146 = arith.mulf %145, %120 : vector<32x256xf32>
    %147 = math.exp %146 : vector<32x256xf32>
    %148 = arith.mulf %143, %147 : vector<32x256xf32>
    %cst_75 = arith.constant 1.000000e+00 : f32
    %149 = vector.broadcast %cst_75 : f32 to vector<32x256xf32>
    %150 = arith.subf %149, %148 : vector<32x256xf32>
    %151 = arith.mulf %119, %150 : vector<32x256xf32>
    %cst_76 = arith.constant 5.000000e-01 : f32
    %152 = vector.broadcast %cst_76 : f32 to vector<32x256xf32>
    %153 = arith.mulf %112, %152 : vector<32x256xf32>
    %cst_77 = arith.constant 1.000000e+00 : f32
    %154 = vector.broadcast %cst_77 : f32 to vector<32x256xf32>
    %155 = arith.addf %151, %154 : vector<32x256xf32>
    %156 = arith.mulf %153, %155 : vector<32x256xf32>
    %c17_i32_78 = arith.constant 17 : i32
    %157 = tpu.dynamic_rotate %156 by %c17_i32_78 dim 1 : vector<32x256xf32>, i32 -> vector<32x256xf32>
    %c0_79 = arith.constant 0 : index
    %c0_80 = arith.constant 0 : index
    %c0_81 = arith.constant 0 : index
    %158 = vector.load %arg3[%c0_79, %c0_80, %c0_81] : memref<9x32x256xf32, #tpu.memory_space<vmem>>, vector<1x32x256xf32>
    %159 = vector.shape_cast %158 : vector<1x32x256xf32> to vector<32x256xf32>
    %160 = arith.mulf %157, %159 : vector<32x256xf32>
    %c0_82 = arith.constant 0 : index
    %c0_83 = arith.constant 0 : index
    %161 = vector.load %arg10[%c0_82, %c0_83] : memref<288x256xf32, #tpu.memory_space<vmem>>, vector<32x256xf32>
    tpu.vector_store %arg10[%c0_82, %c0_83], %160 {strides = array<i32>} : memref<288x256xf32, #tpu.memory_space<vmem>>, vector<32x256xf32>,
    %c16_i32_84 = arith.constant 16 : i32
    %162 = tpu.dynamic_rotate %156 by %c16_i32_84 dim 1 : vector<32x256xf32>, i32 -> vector<32x256xf32>
    %c1_85 = arith.constant 1 : index
    %c0_86 = arith.constant 0 : index
    %c0_87 = arith.constant 0 : index
    %163 = vector.load %arg3[%c1_85, %c0_86, %c0_87] : memref<9x32x256xf32, #tpu.memory_space<vmem>>, vector<1x32x256xf32>
    %164 = vector.shape_cast %163 : vector<1x32x256xf32> to vector<32x256xf32>
    %165 = arith.mulf %162, %164 : vector<32x256xf32>
    %c32 = arith.constant 32 : index
    %c0_88 = arith.constant 0 : index
    %166 = vector.load %arg10[%c32, %c0_88] : memref<288x256xf32, #tpu.memory_space<vmem>>, vector<32x256xf32>
    tpu.vector_store %arg10[%c32, %c0_88], %165 {strides = array<i32>} : memref<288x256xf32, #tpu.memory_space<vmem>>, vector<32x256xf32>,
    %c15_i32_89 = arith.constant 15 : i32
    %167 = tpu.dynamic_rotate %156 by %c15_i32_89 dim 1 : vector<32x256xf32>, i32 -> vector<32x256xf32>
    %c2_90 = arith.constant 2 : index
    %c0_91 = arith.constant 0 : index
    %c0_92 = arith.constant 0 : index
    %168 = vector.load %arg3[%c2_90, %c0_91, %c0_92] : memref<9x32x256xf32, #tpu.memory_space<vmem>>, vector<1x32x256xf32>
    %169 = vector.shape_cast %168 : vector<1x32x256xf32> to vector<32x256xf32>
    %170 = arith.mulf %167, %169 : vector<32x256xf32>
    %c64 = arith.constant 64 : index
    %c0_93 = arith.constant 0 : index
    %171 = vector.load %arg10[%c64, %c0_93] : memref<288x256xf32, #tpu.memory_space<vmem>>, vector<32x256xf32>
    tpu.vector_store %arg10[%c64, %c0_93], %170 {strides = array<i32>} : memref<288x256xf32, #tpu.memory_space<vmem>>, vector<32x256xf32>,
    %c1_i32_94 = arith.constant 1 : i32
    %172 = tpu.dynamic_rotate %156 by %c1_i32_94 dim 1 : vector<32x256xf32>, i32 -> vector<32x256xf32>
    %c3_95 = arith.constant 3 : index
    %c0_96 = arith.constant 0 : index
    %c0_97 = arith.constant 0 : index
    %173 = vector.load %arg3[%c3_95, %c0_96, %c0_97] : memref<9x32x256xf32, #tpu.memory_space<vmem>>, vector<1x32x256xf32>
    %174 = vector.shape_cast %173 : vector<1x32x256xf32> to vector<32x256xf32>
    %175 = arith.mulf %172, %174 : vector<32x256xf32>
    %c96 = arith.constant 96 : index
    %c0_98 = arith.constant 0 : index
    %176 = vector.load %arg10[%c96, %c0_98] : memref<288x256xf32, #tpu.memory_space<vmem>>, vector<32x256xf32>
    tpu.vector_store %arg10[%c96, %c0_98], %175 {strides = array<i32>} : memref<288x256xf32, #tpu.memory_space<vmem>>, vector<32x256xf32>,
    %c128 = arith.constant 128 : index
    %c0_99 = arith.constant 0 : index
    %177 = vector.load %arg10[%c128, %c0_99] : memref<288x256xf32, #tpu.memory_space<vmem>>, vector<32x256xf32>
    tpu.vector_store %arg10[%c128, %c0_99], %156 {strides = array<i32>} : memref<288x256xf32, #tpu.memory_space<vmem>>, vector<32x256xf32>,
    %c255_i32_100 = arith.constant 255 : i32
    %178 = tpu.dynamic_rotate %156 by %c255_i32_100 dim 1 : vector<32x256xf32>, i32 -> vector<32x256xf32>
    %c5_101 = arith.constant 5 : index
    %c0_102 = arith.constant 0 : index
    %c0_103 = arith.constant 0 : index
    %179 = vector.load %arg3[%c5_101, %c0_102, %c0_103] : memref<9x32x256xf32, #tpu.memory_space<vmem>>, vector<1x32x256xf32>
    %180 = vector.shape_cast %179 : vector<1x32x256xf32> to vector<32x256xf32>
    %181 = arith.mulf %178, %180 : vector<32x256xf32>
    %c160 = arith.constant 160 : index
    %c0_104 = arith.constant 0 : index
    %182 = vector.load %arg10[%c160, %c0_104] : memref<288x256xf32, #tpu.memory_space<vmem>>, vector<32x256xf32>
    tpu.vector_store %arg10[%c160, %c0_104], %181 {strides = array<i32>} : memref<288x256xf32, #tpu.memory_space<vmem>>, vector<32x256xf32>,
    %c241_i32_105 = arith.constant 241 : i32
    %183 = tpu.dynamic_rotate %156 by %c241_i32_105 dim 1 : vector<32x256xf32>, i32 -> vector<32x256xf32>
    %c6_106 = arith.constant 6 : index
    %c0_107 = arith.constant 0 : index
    %c0_108 = arith.constant 0 : index
    %184 = vector.load %arg3[%c6_106, %c0_107, %c0_108] : memref<9x32x256xf32, #tpu.memory_space<vmem>>, vector<1x32x256xf32>
    %185 = vector.shape_cast %184 : vector<1x32x256xf32> to vector<32x256xf32>
    %186 = arith.mulf %183, %185 : vector<32x256xf32>
    %c192 = arith.constant 192 : index
    %c0_109 = arith.constant 0 : index
    %187 = vector.load %arg10[%c192, %c0_109] : memref<288x256xf32, #tpu.memory_space<vmem>>, vector<32x256xf32>
    tpu.vector_store %arg10[%c192, %c0_109], %186 {strides = array<i32>} : memref<288x256xf32, #tpu.memory_space<vmem>>, vector<32x256xf32>,
    %c240_i32_110 = arith.constant 240 : i32
    %188 = tpu.dynamic_rotate %156 by %c240_i32_110 dim 1 : vector<32x256xf32>, i32 -> vector<32x256xf32>
    %c7_111 = arith.constant 7 : index
    %c0_112 = arith.constant 0 : index
    %c0_113 = arith.constant 0 : index
    %189 = vector.load %arg3[%c7_111, %c0_112, %c0_113] : memref<9x32x256xf32, #tpu.memory_space<vmem>>, vector<1x32x256xf32>
    %190 = vector.shape_cast %189 : vector<1x32x256xf32> to vector<32x256xf32>
    %191 = arith.mulf %188, %190 : vector<32x256xf32>
    %c224 = arith.constant 224 : index
    %c0_114 = arith.constant 0 : index
    %192 = vector.load %arg10[%c224, %c0_114] : memref<288x256xf32, #tpu.memory_space<vmem>>, vector<32x256xf32>
    tpu.vector_store %arg10[%c224, %c0_114], %191 {strides = array<i32>} : memref<288x256xf32, #tpu.memory_space<vmem>>, vector<32x256xf32>,
    %c239_i32_115 = arith.constant 239 : i32
    %193 = tpu.dynamic_rotate %156 by %c239_i32_115 dim 1 : vector<32x256xf32>, i32 -> vector<32x256xf32>
    %c8_116 = arith.constant 8 : index
    %c0_117 = arith.constant 0 : index
    %c0_118 = arith.constant 0 : index
    %194 = vector.load %arg3[%c8_116, %c0_117, %c0_118] : memref<9x32x256xf32, #tpu.memory_space<vmem>>, vector<1x32x256xf32>
    %195 = vector.shape_cast %194 : vector<1x32x256xf32> to vector<32x256xf32>
    %196 = arith.mulf %193, %195 : vector<32x256xf32>
    %c256 = arith.constant 256 : index
    %c0_119 = arith.constant 0 : index
    %197 = vector.load %arg10[%c256, %c0_119] : memref<288x256xf32, #tpu.memory_space<vmem>>, vector<32x256xf32>
    tpu.vector_store %arg10[%c256, %c0_119], %196 {strides = array<i32>} : memref<288x256xf32, #tpu.memory_space<vmem>>, vector<32x256xf32>,
    %c0_120 = arith.constant 0 : index
    %c0_121 = arith.constant 0 : index
    %198 = vector.load %arg6[%c0_120, %c0_121] : memref<32x288xf32, #tpu.memory_space<vmem>>, vector<32x288xf32>
    %c0_122 = arith.constant 0 : index
    %c0_123 = arith.constant 0 : index
    %199 = vector.load %arg10[%c0_122, %c0_123] : memref<288x256xf32, #tpu.memory_space<vmem>>, vector<288x256xf32>
    %cst_124 = arith.constant dense<0.000000e+00> : vector<32x256xf32>
    %200 = tpu.matmul %198, %199, %cst_124 {dimension_numbers = #tpu.dot_dimension_numbers<[1], [0], [0], [1], [0, 0, 1, 1], [], []>} : vector<32x288xf32>, vector<288x256xf32>, vector<32x256xf32> -> vector<32x256xf32>
    %c0_125 = arith.constant 0 : index
    %c0_126 = arith.constant 0 : index
    %201 = vector.load %arg7[%c0_125, %c0_126] : memref<32x1xf32, #tpu.memory_space<vmem>>, vector<32x1xf32>
    %202 = vector.broadcast %201 : vector<32x1xf32> to vector<32x256xf32>
    %203 = arith.addf %200, %202 : vector<32x256xf32>
    %c0_127 = arith.constant 0 : index
    %c0_128 = arith.constant 0 : index
    %204 = vector.load %arg8[%c0_127, %c0_128] : memref<32x256xf32, #tpu.memory_space<vmem>>, vector<32x256xf32>
    tpu.vector_store %arg8[%c0_127, %c0_128], %203 {strides = array<i32>} : memref<32x256xf32, #tpu.memory_space<vmem>>, vector<32x256xf32>,
    return
  }
}

</mosaic_0001>

<bundles_post_ra>
// kernel: forward.1
= control target key start
LH: loop header
LB: loop body
LE: loop exit
PB: predicated region body
PF: predicated region fallthrough
CT: control target
= control target key end

     0   :  { %13 = vsyncpa [#allocation5], 0  ;;  %s2475_s0 = inlined_call_operand.vmem [shape: f32[8,256], index: 0, kind: input, shape index: {}]   ;;  %s2476_s1 = inlined_call_operand.hbm [shape: f32[9,8,256], index: 1, kind: input, shape index: {}]   ;;  %s2477_s2 = inlined_call_operand.vmem [shape: f32[8,1], index: 2, kind: input, shape index: {}]   ;;  %s2478_s3 = inlined_call_operand.hbm [shape: f32[9,32,256], index: 3, kind: input, shape index: {}]   ;;  %s2479_s4 = inlined_call_operand.vmem [shape: f32[32,32], index: 4, kind: input, shape index: {}]   ;;  %s2480_s5 = inlined_call_operand.vmem [shape: f32[32,1], index: 5, kind: input, shape index: {}]   ;;  %s2481_s6 = inlined_call_operand.vmem [shape: f32[32,288], index: 6, kind: input, shape index: {}]   ;;  %s2482_s7 = inlined_call_operand.vmem [shape: f32[32,1], index: 7, kind: input, shape index: {}]   ;;  %s2483_s8 = inlined_call_operand.vmem [shape: f32[32,256], index: 8, kind: output, shape index: {}]  }
   0x1   :  { %14 = vsyncpa [#allocation7], 0  ;;  %s1590_s27 = smov [#allocation4]   ;;  %s1542_s9 = scalar_lea.hbm %s2476_s1, 2304 }
   0x2   :  { %s22_s28 = sshll.u32 %s1590_s27, 4  ;;  %p1543_p0 = scmp.ne.s32.totalorder %s2476_s1, %s1542_s9  ;;  %s23_s28 = int_to_ptr.vmem [resolvable:$true] %s22_s28 }
   0x3   :  { %p1546_p1 = scmp.lt.u32.totalorder %s1542_s9, %s2476_s1 }
   0x5   :  { %p1548_p2 = pnand %p1546_p1, %p1543_p0 }
   0x7   :  { %1551 = shalt.err (!%p1548_p2)
}
   0x8   :  { %s1552_s14 = scalar_lea.vmem %s23_s28, 2304  ;;  %p1557_p4 = scmp.lt.s32.totalorder %s23_s28, %s23_s28 }
   0x9   :  { %p1553_p3 = scmp.ne.s32.totalorder %s23_s28, %s1552_s14  ;;  %p1558_p5 = scmp.lt.s32.totalorder %s1552_s14, %s1552_s14 }
   0xb   :  { %p1559_p6 = por %p1558_p5, %p1557_p4 }
   0xd   :  { %p1560_p7 = pnand %p1559_p6, %p1553_p3 }
   0xf   :  { %1563 = shalt.err (!%p1560_p7)
}
  0x10   :  { %s1591_s15 = smov 256   ;;  %s1592_s16 = smov 16  }
  0x11   :  { %28 = dma.hbm_to_vmem [thread:$0]  %s2476_s1, 2304, %s23_s28, [#allocation5], %s1591_s15, %s1591_s15, %s1592_s16  }
  0x12   :  { %s1593_s19 = smov [#allocation6]   ;;  %s1564_s23 = scalar_lea.hbm %s2478_s3, 9216 }
  0x13   :  { %s36_s20 = sshll.u32 %s1593_s19, 4  ;;  %p1565_p8 = scmp.ne.s32.totalorder %s2478_s3, %s1564_s23  ;;  %s37_s20 = int_to_ptr.vmem [resolvable:$true] %s36_s20 }
  0x14   :  { %p1568_p9 = scmp.lt.u32.totalorder %s1564_s23, %s2478_s3 }
  0x16   :  { %p1570_p10 = pnand %p1568_p9, %p1565_p8 }
  0x18   :  { %1573 = shalt.err (!%p1570_p10)
}
  0x19   :  { %s1574_s29 = scalar_lea.vmem %s37_s20, 9216  ;;  %p1579_p12 = scmp.lt.s32.totalorder %s37_s20, %s37_s20 }
  0x1a   :  { %p1575_p11 = scmp.ne.s32.totalorder %s37_s20, %s1574_s29  ;;  %p1580_p13 = scmp.lt.s32.totalorder %s1574_s29, %s1574_s29 }
  0x1c   :  { %p1581_p0 = por %p1580_p13, %p1579_p12 }
  0x1e   :  { %p1582_p1 = pnand %p1581_p0, %p1575_p11 }
  0x20   :  { %1585 = shalt.err (!%p1582_p1)
}
  0x21   :  { %42 = dma.hbm_to_vmem [thread:$0]  %s2478_s3, 9216, %s37_s20, [#allocation7], %s1591_s15, %s1591_s15, %s1592_s16  }
  0x22   :  { %1586 = dma.done.wait [#allocation5], 2304  }
  0x23   :  { %1587 = vsyncadd [#allocation5], 4294964992 }
  0x24   :  { %1588 = dma.done.wait [#allocation7], 9216  }
  0x25   :  { %1589 = vsyncadd [#allocation7], 4294958080  ;;  %v1594_v0 = vmov 0   ;;  %v57_v1 = vld [vmem:[%s2475_s0] sm:$0xff]  ;;  %s1595_s10 = smov 17   ;;  %v58_v2 = vld [vmem:[%s2475_s0 + $0x8] sm:$0xff]  ;;  %v68_v6 = vlaneseq }
  0x26   :  { %1500 = vset.pattern.permute.xlu0 %v1594_v0  ;;  %1501 = vset.pattern.permute.xlu1 %v1594_v0  ;;  %s1596_s3 = smov 15   ;;  %s1597_s13 = smov 1   ;;  %v177_v3 = vld [vmem:[%s2477_s2] sm:$0xff]  ;;  %v61_v15 = vld [vmem:[#allocation4 + $0x48] sm:$0xff]  ;;  %v87_v27 = vld [vmem:[#allocation4 + $0x10] sm:$0xff]  ;;  %vm320_vm10 = vcmask 261120  }
  0x27   :  { %79 = vrot.lane.b32.xlu1 %v57_v1, %s1592_s16  ;;  %64 = vrot.lane.b32.xlu0 %v57_v1, %s1595_s10  ;;  %s1598_s14 = smov 127   ;;  %s1599_s0 = smov 113   ;;  %v1700_v9 = vand.u32 127, %v68_v6  ;;  %v60_v14 = vld [vmem:[#allocation4 + $0x40] sm:$0xff]  ;;  %v74_v17 = vld [vmem:[#allocation4 + $0x8] sm:$0xff]  ;;  %v63_v22 = vmul.f32 %v61_v15, %v58_v2  ;;  %v88_v28 = vld [vmem:[#allocation4 + $0x18] sm:$0xff] }
  0x28   :  { %s1600_s15 = smov 112   ;;  %s1601_s19 = smov 111   ;;  %v73_v16 = vld [vmem:[#allocation4] sm:$0xff]  ;;  %v62_v23 = vmul.f32 %v60_v14, %v57_v1  ;;  %v102_v35 = vld [vmem:[#allocation4 + $0x28] sm:$0xff]  ;;  %v115_v41 = vld [vmem:[#allocation4 + $0x30] sm:$0xff] }
  0x29   :  { %vm70_vm0 = vcmp.lt.s32.totalorder %v1700_v9, 17  ;;  %vm83_vm1 = vcmp.lt.s32.totalorder %v1700_v9, 16  ;;  %vm97_vm2 = vcmp.lt.s32.totalorder %v1700_v9, 15  ;;  %vm111_vm3 = vcmp.lt.s32.totalorder %v1700_v9, 1  ;;  %v101_v34 = vld [vmem:[#allocation4 + $0x20] sm:$0xff]  ;;  %v116_v42 = vld [vmem:[#allocation4 + $0x38] sm:$0xff] }
  0x2a   :  { %vm125_vm4 = vcmp.lt.s32.totalorder %v1700_v9, 127  ;;  %vm139_vm5 = vcmp.lt.s32.totalorder %v1700_v9, 113  ;;  %v129_v49 = vld [vmem:[#allocation4 + $0x50] sm:$0xff]  ;;  %v130_v50 = vld [vmem:[#allocation4 + $0x58] sm:$0xff]  ;;  %vm153_vm6 = vcmp.lt.s32.totalorder %v1700_v9, 112  ;;  %v143_v57 = vld [vmem:[#allocation4 + $0x60] sm:$0xff] }
  0x2b   :  { %81 = vrot.lane.b32.xlu1 %v58_v2, %s1592_s16  ;;  %66 = vrot.lane.b32.xlu0 %v58_v2, %s1595_s10  ;;  %v144_v58 = vld [vmem:[#allocation4 + $0x68] sm:$0xff]  ;;  %vm167_vm7 = vcmp.lt.s32.totalorder %v1700_v9, 111  ;;  %v1053_v9 = vld [vmem:[%s2481_s6 + $0x18] sm:$0xff] }
  0x2f   :  { %95 = vrot.lane.b32.xlu1 %v58_v2, %s1596_s3  ;;  %93 = vrot.lane.b32.xlu0 %v57_v1, %s1596_s3 }
  0x33   :  { %109 = vrot.lane.b32.xlu1 %v58_v2, %s1597_s13  ;;  %107 = vrot.lane.b32.xlu0 %v57_v1, %s1597_s13 }
  0x37   :  { %123 = vrot.lane.b32.xlu1 %v58_v2, %s1598_s14  ;;  %121 = vrot.lane.b32.xlu0 %v57_v1, %s1598_s14 }
  0x3b   :  { %137 = vrot.lane.b32.xlu1 %v58_v2, %s1599_s0  ;;  %135 = vrot.lane.b32.xlu0 %v57_v1, %s1599_s0 }
  0x3f   :  { %151 = vrot.lane.b32.xlu1 %v58_v2, %s1600_s15  ;;  %149 = vrot.lane.b32.xlu0 %v57_v1, %s1600_s15 }
  0x43   :  { %163 = vrot.lane.b32.xlu1 %v57_v1, %s1601_s19  ;;  %180 = vperm.xlu0 %1500, %v177_v3   ;;  %v157_v1 = vld [vmem:[#allocation4 + $0x70] sm:$0xff] }
  0x47   :  { %165 = vrot.lane.b32.xlu1 %v58_v2, %s1601_s19  ;;  %v158_v2 = vld [vmem:[#allocation4 + $0x78] sm:$0xff] }
  0x99   :  { %v80_v4 = vpop.permute.xlu1 %79  ;;  %v65_v5 = vpop.permute.xlu0 %64 }
  0x9d   :  { %v82_v7 = vpop.permute.xlu1 %81  ;;  %v67_v8 = vpop.permute.xlu0 %66 }
  0x9e   :  { %v71_v18 = vsel %vm70_vm0, %v65_v5, %v67_v8  ;;  %v72_v19 = vsel %vm70_vm0, %v67_v8, %v65_v5  ;;  %v84_v29 = vsel %vm83_vm1, %v80_v4, %v82_v7  ;;  %v85_v30 = vsel %vm83_vm1, %v82_v7, %v80_v4 }
  0x9f   :  { %v75_v24 = vmul.f32 %v73_v16, %v72_v19  ;;  %v76_v25 = vmul.f32 %v74_v17, %v71_v18  ;;  %v89_v38 = vmul.f32 %v87_v27, %v85_v30  ;;  %v90_v39 = vmul.f32 %v88_v28, %v84_v29 }
  0xa1   :  { %v96_v10 = vpop.permute.xlu1 %95  ;;  %v94_v11 = vpop.permute.xlu0 %93  ;;  %v77_v31 = vadd.f32 %v75_v24, %v62_v23  ;;  %v78_v32 = vadd.f32 %v76_v25, %v63_v22 }
  0xa2   :  { %v98_v36 = vsel %vm97_vm2, %v94_v11, %v96_v10  ;;  %v99_v37 = vsel %vm97_vm2, %v96_v10, %v94_v11  ;;  %v171_v11 = vld [vmem:[#allocation4 + $0x80] sm:$0xff] }
  0xa3   :  { %v92_v45 = vadd.f32 %v90_v39, %v78_v32  ;;  %v91_v46 = vadd.f32 %v89_v38, %v77_v31  ;;  %v103_v47 = vmul.f32 %v101_v34, %v99_v37  ;;  %v104_v48 = vmul.f32 %v102_v35, %v98_v36 }
  0xa5   :  { %v110_v12 = vpop.permute.xlu1 %109  ;;  %v108_v13 = vpop.permute.xlu0 %107  ;;  %v105_v61 = vadd.f32 %v103_v47, %v91_v46  ;;  %v106_v62 = vadd.f32 %v104_v48, %v92_v45 }
  0xa6   :  { %v112_v43 = vsel %vm111_vm3, %v108_v13, %v110_v12  ;;  %v113_v44 = vsel %vm111_vm3, %v110_v12, %v108_v13  ;;  %v172_v12 = vld [vmem:[#allocation4 + $0x88] sm:$0xff] }
  0xa7   :  { %v117_v53 = vmul.f32 %v115_v41, %v113_v44  ;;  %v118_v54 = vmul.f32 %v116_v42, %v112_v43 }
  0xa9   :  { %v124_v20 = vpop.permute.xlu1 %123  ;;  %v122_v21 = vpop.permute.xlu0 %121  ;;  %v119_v5 = vadd.f32 %v117_v53, %v105_v61  ;;  %v120_v6 = vadd.f32 %v118_v54, %v106_v62 }
  0xaa   :  { %v126_v51 = vsel %vm125_vm4, %v122_v21, %v124_v20  ;;  %v127_v52 = vsel %vm125_vm4, %v124_v20, %v122_v21 }
  0xab   :  { %v131_v63 = vmul.f32 %v129_v49, %v126_v51  ;;  %v132_v0 = vmul.f32 %v130_v50, %v127_v52 }
  0xad   :  { %v138_v26 = vpop.permute.xlu1 %137  ;;  %v136_v33 = vpop.permute.xlu0 %135  ;;  %v133_v15 = vadd.f32 %v131_v63, %v119_v5  ;;  %v134_v16 = vadd.f32 %v132_v0, %v120_v6 }
  0xae   :  { %v140_v59 = vsel %vm139_vm5, %v136_v33, %v138_v26  ;;  %v141_v60 = vsel %vm139_vm5, %v138_v26, %v136_v33 }
  0xaf   :  { %v145_v7 = vmul.f32 %v143_v57, %v140_v59  ;;  %v146_v8 = vmul.f32 %v144_v58, %v141_v60 }
  0xb1   :  { %v152_v40 = vpop.permute.xlu1 %151  ;;  %v150_v55 = vpop.permute.xlu0 %149  ;;  %v147_v19 = vadd.f32 %v145_v7, %v133_v15  ;;  %v148_v20 = vadd.f32 %v146_v8, %v134_v16 }
  0xb2   :  { %v154_v3 = vsel %vm153_vm6, %v150_v55, %v152_v40  ;;  %v155_v4 = vsel %vm153_vm6, %v152_v40, %v150_v55 }
  0xb3   :  { %v159_v17 = vmul.f32 %v157_v1, %v154_v3  ;;  %v160_v18 = vmul.f32 %v158_v2, %v155_v4 }
  0xb5   :  { %v164_v56 = vpop.permute.xlu1 %163  ;;  %v161_v23 = vadd.f32 %v159_v17, %v147_v19  ;;  %v162_v24 = vadd.f32 %v160_v18, %v148_v20 }
  0xb9   :  { %v166_v10 = vpop.permute.xlu1 %165 }
  0xba   :  { %v168_v13 = vsel %vm167_vm7, %v164_v56, %v166_v10  ;;  %v169_v14 = vsel %vm167_vm7, %v166_v10, %v164_v56 }
  0xbb   :  { %v173_v21 = vmul.f32 %v171_v11, %v168_v13  ;;  %v174_v22 = vmul.f32 %v172_v12, %v169_v14  ;;  %v1602_v12 = vmov -1.0  }
  0xbd   :  { %v176_v25 = vadd.f32 %v174_v22, %v162_v24  ;;  %v175_v26 = vadd.f32 %v173_v21, %v161_v23  ;;  %v2484_v24 = vmov 0.0  }
  0xbe   :  { %397 = vmatprep.mubr.f32.mxu0 %v2484_v24 }
  0xc2   :  { %v181_v27 = vpop.permute.xlu0 %180 }
  0xc3   :  { %v183_v28 = vadd.f32 %v181_v27, %v175_v26  ;;  %v184_v29 = vadd.f32 %v181_v27, %v176_v25  ;;  %v296_v25 = vld [vmem:[%s2480_s5] sm:$0xff]  ;;  %v298_v26 = vld [vmem:[%s2480_s5 + $0x10] sm:$0xff]  ;;  %v297_v27 = vld [vmem:[%s2480_s5 + $0x8] sm:$0xff] }
  0xc5   :  { %v185_v30 = vmul.f32 0.70710677, %v183_v28  ;;  %v186_v31 = vmul.f32 0.70710677, %v184_v29  ;;  %v237_v18 = vmul.f32 0.5, %v183_v28  ;;  %v238_v20 = vmul.f32 0.5, %v184_v29 }
  0xc6   :  { %v299_v28 = vld [vmem:[%s2480_s5 + $0x18] sm:$0xff]  ;;  %v1763_v29 = vld [vmem:[#allocation6 + $0x140] sm:$0xff] }
  0xc7   :  { %v191_v32 = vand.u32 2147483647, %v185_v30  ;;  %v192_v33 = vand.u32 2147483647, %v186_v31  ;;  %vm187_vm8 = vcmp.ge.f32.partialorder %v185_v30, 0.0  ;;  %vm188_vm9 = vcmp.ge.f32.partialorder %v186_v31, 0.0 }
  0xc8   :  { %v189_v13 = vsel %vm187_vm8, 1.0, %v1602_v12  ;;  %v190_v15 = vsel %vm188_vm9, 1.0, %v1602_v12  ;;  %v1765_v31 = vld [vmem:[#allocation6 + $0x148] sm:$0xff] }
  0xc9   :  { %v193_v34 = vmul.f32 0.3275911, %v191_v32  ;;  %v194_v35 = vmul.f32 0.3275911, %v192_v33  ;;  %v223_v42 = vsub.f32 0.0, %v191_v32  ;;  %v224_v44 = vsub.f32 0.0, %v192_v33 }
  0xcb   :  { %v195_v36 = vadd.f32 1.0, %v193_v34  ;;  %v196_v37 = vadd.f32 1.0, %v194_v35  ;;  %v225_v48 = vmul.f32 %v223_v42, %v191_v32  ;;  %v226_v50 = vmul.f32 %v224_v44, %v192_v33  ;;  %v266_v42 = vld [vmem:[#allocation6 + $0x1c8] sm:$0xff] }
  0xcd   :  { %1502 = vrcp.f32 %v195_v36  ;;  %v227_v54 = vmul.f32 1.442695, %v225_v48  ;;  %v229_v56 = vmul.f32 1.442695, %v226_v50 }
  0xce   :  { %1504 = vrcp.f32 %v196_v37 }
  0xcf   :  { %1506 = vpow2.f32 %v227_v54 }
  0xd0   :  { %1508 = vpow2.f32 %v229_v56 }
  0xd7   :  { %v1503_v38 = vpop.eup %1502 }
  0xd8   :  { %v1505_v39 = vpop.eup %1504  ;;  %v199_v40 = vmul.f32 %v1503_v38, %v195_v36 }
  0xd9   :  { %v200_v41 = vmul.f32 %v1505_v39, %v196_v37  ;;  %v1507_v5 = vpop.eup %1506 }
  0xda   :  { %v201_v43 = vsub.f32 2.0, %v199_v40  ;;  %v1509_v7 = vpop.eup %1508 }
  0xdb   :  { %v202_v45 = vsub.f32 2.0, %v200_v41  ;;  %v265_v41 = vld [vmem:[#allocation6 + $0x1c0] sm:$0xff] }
  0xdc   :  { %v203_v46 = vmul.f32 %v1503_v38, %v201_v43 }
  0xdd   :  { %v204_v47 = vmul.f32 %v1505_v39, %v202_v45  ;;  %v278_v45 = vld [vmem:[#allocation6 + $0x200] sm:$0xff] }
  0xde   :  { %v205_v49 = vmul.f32 1.0614054, %v203_v46 }
  0xdf   :  { %v206_v51 = vmul.f32 1.0614054, %v204_v47 }
  0xe0   :  { %v1362_v52 = vadd.f32 -1.4531521, %v205_v49 }
  0xe1   :  { %v1363_v53 = vadd.f32 -1.4531521, %v206_v51 }
  0xe2   :  { %v209_v55 = vmul.f32 %v1362_v52, %v203_v46 }
  0xe3   :  { %v210_v57 = vmul.f32 %v1363_v53, %v204_v47 }
  0xe4   :  { %v211_v58 = vadd.f32 1.4214138, %v209_v55 }
  0xe5   :  { %v212_v59 = vadd.f32 1.4214138, %v210_v57  ;;  %v284_v57 = vld [vmem:[%s2479_s4] sm:$0xff] }
  0xe6   :  { %v213_v60 = vmul.f32 %v211_v58, %v203_v46  ;;  %v285_v58 = vld [vmem:[%s2479_s4 + $0x8] sm:$0xff] }
  0xe7   :  { %v214_v61 = vmul.f32 %v212_v59, %v204_v47  ;;  %v286_v59 = vld [vmem:[%s2479_s4 + $0x10] sm:$0xff] }
  0xe8   :  { %v1364_v62 = vadd.f32 -0.28449672, %v213_v60  ;;  %v287_v60 = vld [vmem:[%s2479_s4 + $0x18] sm:$0xff] }
  0xe9   :  { %v1365_v63 = vadd.f32 -0.28449672, %v214_v61 }
  0xea   :  { %v217_v0 = vmul.f32 %v1364_v62, %v203_v46 }
  0xeb   :  { %v218_v1 = vmul.f32 %v1365_v63, %v204_v47 }
  0xec   :  { %v219_v2 = vadd.f32 0.2548296, %v217_v0 }
  0xed   :  { %v220_v3 = vadd.f32 0.2548296, %v218_v1 }
  0xee   :  { %v221_v4 = vmul.f32 %v219_v2, %v203_v46  ;;  %v279_v46 = vld [vmem:[#allocation6 + $0x208] sm:$0xff] }
  0xef   :  { %v222_v6 = vmul.f32 %v220_v3, %v204_v47 }
  0xf0   :  { %v231_v8 = vmul.f32 %v1507_v5, %v221_v4 }
  0xf1   :  { %v232_v10 = vmul.f32 %v1509_v7, %v222_v6 }
  0xf2   :  { %v233_v11 = vsub.f32 1.0, %v231_v8 }
  0xf3   :  { %v234_v14 = vsub.f32 1.0, %v232_v10 }
  0xf4   :  { %v235_v16 = vmul.f32 %v233_v11, %v189_v13 }
  0xf5   :  { %v236_v17 = vmul.f32 %v234_v14, %v190_v15 }
  0xf6   :  { %v239_v19 = vadd.f32 1.0, %v235_v16 }
  0xf7   :  { %v240_v21 = vadd.f32 1.0, %v236_v17 }
  0xf8   :  { %v241_v22 = vmul.f32 %v239_v19, %v237_v18 }
  0xf9   :  { %v242_v23 = vmul.f32 %v240_v21, %v238_v20 }
  0xfa   :  { %245 = vrot.lane.b32.xlu0 %v241_v22, %s1598_s14 }
  0xfb   :  { %247 = vrot.lane.b32.xlu1 %v242_v23, %s1598_s14 }
  0xfe   :  { %258 = vrot.lane.b32.xlu0 %v241_v22, %s1600_s15 }
  0xff   :  { %260 = vrot.lane.b32.xlu1 %v242_v23, %s1600_s15 }
 0x102   :  { %271 = vrot.lane.b32.xlu0 %v241_v22, %s1601_s19 }
 0x103   :  { %273 = vrot.lane.b32.xlu1 %v242_v23, %s1601_s19 }
 0x106   :  { %302 = vperm.xlu0 %1500, %v296_v25  }
 0x107   :  { %307 = vperm.xlu1 %1501, %v297_v27  }
 0x10a   :  { %312 = vperm.xlu0 %1500, %v298_v26  }
 0x10b   :  { %317 = vperm.xlu1 %1501, %v299_v28  }
 0x16c   :  { %v246_v30 = vpop.permute.xlu0 %245 }
 0x16d   :  { %v248_v32 = vpop.permute.xlu1 %247 }
 0x16e   :  { %v249_v33 = vsel %vm125_vm4, %v246_v30, %v248_v32  ;;  %v250_v34 = vsel %vm125_vm4, %v248_v32, %v246_v30 }
 0x16f   :  { %v254_v35 = vmul.f32 %v1763_v29, %v249_v33  ;;  %v255_v36 = vmul.f32 %v1765_v31, %v250_v34 }
 0x170   :  { %v259_v37 = vpop.permute.xlu0 %258 }
 0x171   :  { %v261_v38 = vpop.permute.xlu1 %260  ;;  %v1390_v39 = vpack.c.bf16 %v255_v36, %v242_v23  ;;  %v1392_v40 = vpack.c.bf16 %v254_v35, %v241_v22 }
 0x172   :  { %v262_v43 = vsel %vm153_vm6, %v259_v37, %v261_v38  ;;  %v263_v44 = vsel %vm153_vm6, %v261_v38, %v259_v37 }
 0x173   :  { %1391 = vmatprep.subr.bf16.mxu0 %v1390_v39  ;;  %v267_v51 = vmul.f32 %v265_v41, %v262_v43  ;;  %v268_v52 = vmul.f32 %v266_v42, %v263_v44 }
 0x174   :  { %1393 = vmatpush1.bf16.msra.mxu0 %v1392_v40  ;;  %v272_v47 = vpop.permute.xlu0 %271 }
 0x175   :  { %v274_v48 = vpop.permute.xlu1 %273 }
 0x176   :  { %v275_v49 = vsel %vm167_vm7, %v272_v47, %v274_v48  ;;  %v276_v50 = vsel %vm167_vm7, %v274_v48, %v272_v47 }
 0x177   :  { %v280_v53 = vmul.f32 %v278_v45, %v275_v49  ;;  %v281_v54 = vmul.f32 %v279_v46, %v276_v50 }
 0x179   :  { %v1394_v55 = vpack.c.bf16 %v281_v54, %v268_v52  ;;  %v1396_v56 = vpack.c.bf16 %v280_v53, %v267_v51 }
 0x17b   :  { %1395 = vmatprep.subr.bf16.mxu0 %v1394_v55 }
 0x17c   :  { %1397 = vmatpush1.bf16.msra.mxu0 %v1396_v56 }
 0x17f   :  { %1366 = vmatmul.mubr.msk.f32.vlgmr.msra.gmra.mrb[0].mxu0 %vm320_vm10, %v284_v57 }
 0x180   :  { %403 = vmatprep.mubr.f32.mxu0 %v2484_v24 }
 0x183   :  { %1367 = vmatmul.mubr.msk.f32.gmra.mrb[2].mxu0 %vm320_vm10, %v285_v58 }
 0x184   :  { %409 = vmatprep.mubr.f32.mxu0 %v2484_v24 }
 0x185   :  { %v303_v61 = vpop.permute.xlu0 %302 }
 0x186   :  { %v308_v3 = vpop.permute.xlu1 %307 }
 0x187   :  { %1368 = vmatmul.mubr.msk.f32.gmra.mrb[4].mxu0 %vm320_vm10, %v286_v59 }
 0x188   :  { %415 = vmatprep.mubr.f32.mxu0 %v2484_v24 }
 0x189   :  { %v313_v26 = vpop.permute.xlu0 %312 }
 0x18a   :  { %v318_v30 = vpop.permute.xlu1 %317 }
 0x18b   :  { %1369 = vmatmul.mubr.msk.f32.gmra.mrb[6].mxu0 %vm320_vm10, %v287_v60 }
 0x18c   :  { %1323 = vmatprep.mubr.f32.mxu0 %v2484_v24 }
 0x252   :  { %v399_v62 = vpop.f32.mrb[0].mxu0 }
 0x253   :  { %v1801_v63 = vadd.f32 %v399_v62, %v303_v61  ;;  %v401_v0 = vpop.f32.mrb[1].mxu0 }
 0x254   :  { %v1803_v1 = vadd.f32 %v401_v0, %v303_v61 }
 0x255   :  { %v1806_v2 = vmul.f32 0.70710677, %v1801_v63 }
 0x256   :  { %v1809_v4 = vmul.f32 0.70710677, %v1803_v1  ;;  %v405_v5 = vpop.f32.mrb[2].mxu0 }
 0x257   :  { %v446_v6 = vand.u32 2147483647, %v1806_v2  ;;  %v1812_v7 = vadd.f32 %v405_v5, %v308_v3  ;;  %v407_v8 = vpop.f32.mrb[3].mxu0  ;;  %vm430_vm11 = vcmp.ge.f32.partialorder %v1806_v2, 0.0 }
 0x258   :  { %v1815_v10 = vand.u32 2147483647, %v1809_v4  ;;  %v1817_v11 = vadd.f32 %v407_v8, %v308_v3  ;;  %vm431_vm13 = vcmp.ge.f32.partialorder %v1809_v4, 0.0 }
 0x259   :  { %v454_v13 = vmul.f32 0.3275911, %v446_v6  ;;  %v1820_v14 = vmul.f32 0.70710677, %v1812_v7  ;;  %v574_v46 = vsub.f32 0.0, %v446_v6 }
 0x25a   :  { %v455_v15 = vmul.f32 0.3275911, %v1815_v10  ;;  %v1824_v16 = vmul.f32 0.70710677, %v1817_v11  ;;  %v411_v19 = vpop.f32.mrb[4].mxu0 }
 0x25b   :  { %v462_v17 = vadd.f32 1.0, %v454_v13  ;;  %v448_v18 = vand.u32 2147483647, %v1820_v14  ;;  %v413_v21 = vpop.f32.mrb[5].mxu0  ;;  %v1831_v33 = vadd.f32 %v411_v19, %v313_v26  ;;  %v582_v56 = vmul.f32 %v574_v46, %v446_v6 }
 0x25c   :  { %v463_v20 = vadd.f32 1.0, %v455_v15  ;;  %v1828_v23 = vand.u32 2147483647, %v1824_v16  ;;  %v1845_v40 = vadd.f32 %v413_v21, %v313_v26  ;;  %vm432_vm12 = vcmp.ge.f32.partialorder %v1820_v14, 0.0 }
 0x25d   :  { %1510 = vrcp.f32 %v462_v17  ;;  %v456_v22 = vmul.f32 0.3275911, %v448_v18  ;;  %v1836_v36 = vmul.f32 0.70710677, %v1831_v33  ;;  %v576_v58 = vsub.f32 0.0, %v448_v18 }
 0x25e   :  { %1512 = vrcp.f32 %v463_v20  ;;  %v417_v25 = vpop.f32.mrb[6].mxu0  ;;  %v457_v32 = vmul.f32 0.3275911, %v1828_v23  ;;  %v1852_v50 = vmul.f32 0.70710677, %v1845_v40  ;;  %vm433_vm14 = vcmp.ge.f32.partialorder %v1824_v16, 0.0 }
 0x25f   :  { %v464_v27 = vadd.f32 1.0, %v456_v22  ;;  %v419_v28 = vpop.f32.mrb[7].mxu0  ;;  %v1833_v34 = vadd.f32 %v417_v25, %v318_v30  ;;  %v1842_v38 = vand.u32 2147483647, %v1836_v36  ;;  %v590_v15 = vmul.f32 1.442695, %v582_v56 }
 0x260   :  { %v465_v35 = vadd.f32 1.0, %v457_v32  ;;  %v1856_v59 = vadd.f32 %v419_v28, %v318_v30  ;;  %v1859_v0 = vand.u32 2147483647, %v1852_v50  ;;  %v584_v19 = vmul.f32 %v576_v58, %v448_v18 }
 0x261   :  { %1514 = vrcp.f32 %v464_v27  ;;  %v1839_v37 = vmul.f32 0.70710677, %v1833_v34  ;;  %v458_v39 = vmul.f32 0.3275911, %v1842_v38  ;;  %vm434_vm15 = vcmp.ge.f32.partialorder %v1836_v36, 0.0 }
 0x262   :  { %1516 = vrcp.f32 %v465_v35  ;;  %v1863_v8 = vmul.f32 0.70710677, %v1856_v59  ;;  %v459_v25 = vmul.f32 0.3275911, %v1859_v0  ;;  %vm435_vm9 = vcmp.ge.f32.partialorder %v1852_v50, 0.0 }
 0x263   :  { %v1848_v42 = vand.u32 2147483647, %v1839_v37  ;;  %v466_v45 = vadd.f32 1.0, %v458_v39  ;;  %vm436_vm8 = vcmp.ge.f32.partialorder %v1839_v37, 0.0 }
 0x264   :  { %v1867_v26 = vand.u32 2147483647, %v1863_v8 }
 0x265   :  { %v460_v48 = vmul.f32 0.3275911, %v1848_v42  ;;  %1518 = vrcp.f32 %v466_v45 }
 0x267   :  { %v1511_v41 = vpop.eup %1510  ;;  %v468_v53 = vadd.f32 1.0, %v460_v48  ;;  %v461_v48 = vmul.f32 0.3275911, %v1867_v26 }
 0x268   :  { %v1513_v43 = vpop.eup %1512  ;;  %v478_v44 = vmul.f32 %v1511_v41, %v462_v17 }
 0x269   :  { %v479_v47 = vmul.f32 %v1513_v43, %v463_v20  ;;  %1520 = vrcp.f32 %v468_v53 }
 0x26a   :  { %v486_v49 = vsub.f32 2.0, %v478_v44  ;;  %1522 = vpow2.f32 %v590_v15 }
 0x26b   :  { %v1515_v51 = vpop.eup %1514  ;;  %v487_v52 = vsub.f32 2.0, %v479_v47  ;;  %v467_v47 = vadd.f32 1.0, %v459_v25 }
 0x26c   :  { %v494_v54 = vmul.f32 %v1511_v41, %v486_v49  ;;  %v480_v55 = vmul.f32 %v1515_v51, %v464_v27  ;;  %v1517_v60 = vpop.eup %1516  ;;  %v594_v41 = vmul.f32 1.442695, %v584_v19 }
 0x26d   :  { %v1854_v57 = vmul.f32 %v1513_v43, %v487_v52  ;;  %v481_v5 = vmul.f32 %v1517_v60, %v465_v35  ;;  %v575_v35 = vsub.f32 0.0, %v1815_v10 }
 0x26e   :  { %v502_v61 = vmul.f32 1.0614054, %v494_v54  ;;  %v488_v62 = vsub.f32 2.0, %v480_v55  ;;  %1524 = vpow2.f32 %v594_v41 }
 0x26f   :  { %v503_v3 = vmul.f32 1.0614054, %v1854_v57  ;;  %v489_v20 = vsub.f32 2.0, %v481_v5  ;;  %v1519_v30 = vpop.eup %1518  ;;  %1526 = vrcp.f32 %v467_v47 }
 0x270   :  { %v1370_v13 = vadd.f32 -1.4531521, %v502_v61  ;;  %v496_v6 = vmul.f32 %v1515_v51, %v488_v62  ;;  %v482_v43 = vmul.f32 %v1519_v30, %v466_v45 }
 0x271   :  { %v1371_v17 = vadd.f32 -1.4531521, %v503_v3  ;;  %v1870_v28 = vmul.f32 %v1517_v60, %v489_v20  ;;  %v583_v3 = vmul.f32 %v575_v35, %v1815_v10 }
 0x272   :  { %v518_v21 = vmul.f32 %v1370_v13, %v494_v54  ;;  %v504_v22 = vmul.f32 1.0614054, %v496_v6  ;;  %v490_v52 = vsub.f32 2.0, %v482_v43 }
 0x273   :  { %v519_v27 = vmul.f32 %v1371_v17, %v1854_v57  ;;  %v505_v18 = vmul.f32 1.0614054, %v1870_v28  ;;  %v1521_v55 = vpop.eup %1520  ;;  %v469_v17 = vadd.f32 1.0, %v461_v48  ;;  %v592_v10 = vmul.f32 1.442695, %v583_v3 }
 0x274   :  { %v526_v32 = vadd.f32 1.4214138, %v518_v21  ;;  %v1372_v39 = vadd.f32 -1.4531521, %v504_v22  ;;  %v484_v61 = vmul.f32 %v1521_v55, %v468_v53  ;;  %v1878_v15 = vmul.f32 %v1519_v30, %v490_v52 }
 0x275   :  { %v527_v49 = vadd.f32 1.4214138, %v519_v27  ;;  %v1373_v51 = vadd.f32 -1.4531521, %v505_v18  ;;  %v577_v22 = vsub.f32 0.0, %v1828_v23  ;;  %v1523_v27 = vpop.eup %1522  ;;  %1528 = vrcp.f32 %v469_v17 }
 0x276   :  { %v534_v44 = vmul.f32 %v526_v32, %v494_v54  ;;  %v520_v46 = vmul.f32 %v1372_v39, %v496_v6  ;;  %v492_v21 = vsub.f32 2.0, %v484_v61  ;;  %v506_v35 = vmul.f32 1.0614054, %v1878_v15 }
 0x277   :  { %v521_v60 = vmul.f32 %v1373_v51, %v1870_v28  ;;  %v535_v45 = vmul.f32 %v527_v49, %v1854_v57  ;;  %v585_v43 = vmul.f32 %v577_v22, %v1828_v23  ;;  %1530 = vpow2.f32 %v592_v10 }
 0x278   :  { %v1378_v56 = vadd.f32 -0.28449672, %v534_v44  ;;  %v528_v58 = vadd.f32 1.4214138, %v520_v46  ;;  %v1884_v18 = vmul.f32 %v1521_v55, %v492_v21  ;;  %v438_v44 = vsel %vm430_vm11, 1.0, %v1602_v12 }
 0x279   :  { %v529_v13 = vadd.f32 1.4214138, %v521_v60  ;;  %v1379_v32 = vadd.f32 -0.28449672, %v535_v45  ;;  %v1374_v49 = vadd.f32 -1.4531521, %v506_v35 }
 0x27a   :  { %v550_v62 = vmul.f32 %v1378_v56, %v494_v54  ;;  %v536_v5 = vmul.f32 %v528_v58, %v496_v6  ;;  %v508_v55 = vmul.f32 1.0614054, %v1884_v18  ;;  %v596_v60 = vmul.f32 1.442695, %v585_v43 }
 0x27b   :  { %v537_v30 = vmul.f32 %v529_v13, %v1870_v28  ;;  %v551_v48 = vmul.f32 %v1379_v32, %v1854_v57  ;;  %v630_v23 = vmul.f32 0.5, %v1801_v63  ;;  %v632_v22 = vmul.f32 0.5, %v1812_v7 }
 0x27c   :  { %v558_v19 = vadd.f32 0.2548296, %v550_v62  ;;  %v1380_v20 = vadd.f32 -0.28449672, %v536_v5  ;;  %v522_v5 = vmul.f32 %v1374_v49, %v1878_v15  ;;  %1532 = vpow2.f32 %v596_v60 }
 0x27d   :  { %v1381_v58 = vadd.f32 -0.28449672, %v537_v30  ;;  %v559_v3 = vadd.f32 0.2548296, %v551_v48  ;;  %vm437_vm11 = vcmp.ge.f32.partialorder %v1863_v8, 0.0 }
 0x27e   :  { %v566_v25 = vmul.f32 %v558_v19, %v494_v54  ;;  %v552_v53 = vmul.f32 %v1380_v20, %v496_v6  ;;  %v1525_v54 = vpop.eup %1524  ;;  %v1376_v20 = vadd.f32 -1.4531521, %v508_v55  ;;  %v439_v55 = vsel %vm431_vm13, 1.0, %v1602_v12 }
 0x27f   :  { %v1527_v51 = vpop.eup %1526  ;;  %v553_v19 = vmul.f32 %v1381_v58, %v1870_v28  ;;  %v567_v63 = vmul.f32 %v559_v3, %v1854_v57  ;;  %v445_v50 = vsel %vm437_vm11, 1.0, %v1602_v12 }
 0x280   :  { %v606_v39 = vmul.f32 %v1523_v27, %v566_v25  ;;  %v560_v41 = vadd.f32 0.2548296, %v552_v53  ;;  %v483_v45 = vmul.f32 %v1527_v51, %v467_v47  ;;  %v1529_v21 = vpop.eup %1528  ;;  %v530_v53 = vadd.f32 1.4214138, %v522_v5 }
 0x281   :  { %v561_v47 = vadd.f32 0.2548296, %v553_v19  ;;  %v524_v10 = vmul.f32 %v1376_v20, %v1884_v18  ;;  %v485_v35 = vmul.f32 %v1529_v21, %v469_v17  ;;  %v441_v5 = vsel %vm433_vm14, 1.0, %v1602_v12 }
 0x282   :  { %v614_v46 = vsub.f32 1.0, %v606_v39  ;;  %v568_v2 = vmul.f32 %v560_v41, %v496_v6  ;;  %v440_v6 = vsel %vm432_vm12, 1.0, %v1602_v12  ;;  %v491_v27 = vsub.f32 2.0, %v483_v45  ;;  %v1531_v39 = vpop.eup %1530 }
 0x283   :  { %v578_v41 = vsub.f32 0.0, %v1842_v38  ;;  %v607_v7 = vmul.f32 %v1531_v39, %v567_v63  ;;  %v569_v57 = vmul.f32 %v561_v47, %v1870_v28  ;;  %v538_v43 = vmul.f32 %v530_v53, %v1878_v15 }
 0x284   :  { %v622_v52 = vmul.f32 %v614_v46, %v438_v44  ;;  %v608_v56 = vmul.f32 %v1525_v54, %v568_v2  ;;  %v1909_v30 = vmul.f32 %v1527_v51, %v491_v27  ;;  %v532_v44 = vadd.f32 1.4214138, %v524_v10 }
 0x285   :  { %v493_v46 = vsub.f32 2.0, %v485_v35  ;;  %v586_v17 = vmul.f32 %v578_v41, %v1842_v38  ;;  %v580_v2 = vsub.f32 0.0, %v1848_v42  ;;  %v615_v48 = vsub.f32 1.0, %v607_v7 }
 0x286   :  { %v638_v61 = vadd.f32 1.0, %v622_v52  ;;  %v616_v62 = vsub.f32 1.0, %v608_v56  ;;  %v1533_v54 = vpop.eup %1532  ;;  %v507_v28 = vmul.f32 1.0614054, %v1909_v30  ;;  %v1382_v51 = vadd.f32 -0.28449672, %v538_v43 }
 0x287   :  { %v609_v49 = vmul.f32 %v1533_v54, %v569_v57  ;;  %v540_v52 = vmul.f32 %v532_v44, %v1884_v18  ;;  %v1922_v56 = vmul.f32 %v1529_v21, %v493_v46  ;;  %v598_v38 = vmul.f32 1.442695, %v586_v17 }
 0x288   :  { %v1894_v13 = vmul.f32 %v638_v61, %v630_v23  ;;  %v624_v14 = vmul.f32 %v616_v62, %v440_v6  ;;  %v588_v58 = vmul.f32 %v580_v2, %v1848_v42  ;;  %v623_v4 = vmul.f32 %v615_v48, %v439_v55 }
 0x289   :  { %v1375_v60 = vadd.f32 -1.4531521, %v507_v28  ;;  %v617_v23 = vsub.f32 1.0, %v609_v49  ;;  %v554_v61 = vmul.f32 %v1382_v51, %v1878_v15  ;;  %v1384_v62 = vadd.f32 -0.28449672, %v540_v52 }
 0x28a   :  { %v640_v25 = vadd.f32 1.0, %v624_v14  ;;  %654 = vrot.lane.b32.xlu0 %v1894_v13, %s1595_s10  ;;  %v509_v3 = vmul.f32 1.0614054, %v1922_v56  ;;  %1534 = vpow2.f32 %v598_v38  ;;  %v602_v42 = vmul.f32 1.442695, %v588_v58 }
 0x28b   :  { %v639_v6 = vadd.f32 1.0, %v623_v4  ;;  %v523_v16 = vmul.f32 %v1375_v60, %v1909_v30  ;;  %v625_v45 = vmul.f32 %v617_v23, %v441_v5  ;;  %v562_v14 = vadd.f32 0.2548296, %v554_v61 }
 0x28c   :  { %v1901_v32 = vmul.f32 %v640_v25, %v632_v22  ;;  %v556_v19 = vmul.f32 %v1384_v62, %v1884_v18  ;;  %v1377_v20 = vadd.f32 -1.4531521, %v509_v3  ;;  %v631_v21 = vmul.f32 0.5, %v1803_v1 }
 0x28d   :  { %1536 = vpow2.f32 %v602_v42  ;;  %v531_v25 = vadd.f32 1.4214138, %v523_v16  ;;  %v641_v63 = vadd.f32 1.0, %v625_v45  ;;  %v570_v53 = vmul.f32 %v562_v14, %v1878_v15 }
 0x28e   :  { %656 = vrot.lane.b32.xlu1 %v1901_v32, %s1595_s10  ;;  %702 = vrot.lane.b32.xlu0 %v1894_v13, %s1592_s16  ;;  %v1945_v22 = vmul.f32 %v639_v6, %v631_v21  ;;  %v564_v27 = vadd.f32 0.2548296, %v556_v19  ;;  %v525_v47 = vmul.f32 %v1377_v20, %v1922_v56  ;;  %v579_v10 = vsub.f32 0.0, %v1859_v0 }
 0x28f   :  { %v633_v1 = vmul.f32 0.5, %v1817_v11  ;;  %v539_v39 = vmul.f32 %v531_v25, %v1909_v30  ;;  %v581_v44 = vsub.f32 0.0, %v1867_v26  ;;  %v634_v4 = vmul.f32 0.5, %v1831_v33 }
 0x290   :  { %v572_v15 = vmul.f32 %v564_v27, %v1884_v18  ;;  %v533_v57 = vadd.f32 1.4214138, %v525_v47  ;;  %v587_v43 = vmul.f32 %v579_v10, %v1859_v0  ;;  %v442_v0 = vsel %vm434_vm15, 1.0, %v1602_v12  ;;  %v1051_v27 = vld [vmem:[%s2481_s6 + $0x8] sm:$0xff] }
 0x291   :  { %v1956_v41 = vmul.f32 %v641_v63, %v633_v1  ;;  %v1383_v17 = vadd.f32 -0.28449672, %v539_v39  ;;  %v589_v48 = vmul.f32 %v581_v44, %v1867_v26  ;;  %v444_v26 = vsel %vm436_vm8, 1.0, %v1602_v12  ;;  %1234 = vmatprep.mubr.f32.mxu1 %v1051_v27  ;;  %v1134_v1 = vld [vmem:[%s2482_s7] sm:$0xff]  ;;  %v1137_v44 = vld [vmem:[%s2482_s7 + $0x18] sm:$0xff] }
 0x292   :  { %704 = vrot.lane.b32.xlu1 %v1901_v32, %s1592_s16  ;;  %751 = vrot.lane.b32.xlu0 %v1894_v13, %s1596_s3  ;;  %v541_v54 = vmul.f32 %v533_v57, %v1922_v56  ;;  %v600_v18 = vmul.f32 1.442695, %v587_v43  ;;  %v636_v3 = vmul.f32 0.5, %v1833_v34  ;;  %v443_v45 = vsel %vm435_vm9, 1.0, %v1602_v12 }
 0x293   :  { %v555_v36 = vmul.f32 %v1383_v17, %v1909_v30  ;;  %v604_v52 = vmul.f32 1.442695, %v589_v48  ;;  %v635_v21 = vmul.f32 0.5, %v1845_v40  ;;  %v637_v63 = vmul.f32 0.5, %v1856_v59 }
 0x294   :  { %v1535_v35 = vpop.eup %1534  ;;  %v1385_v51 = vadd.f32 -0.28449672, %v541_v54  ;;  %1538 = vpow2.f32 %v600_v18  ;;  %v678_v54 = vld [vmem:[#allocation6] sm:$0xff] }
 0x295   :  { %v610_v7 = vmul.f32 %v1535_v35, %v570_v53  ;;  %v563_v58 = vadd.f32 0.2548296, %v555_v36  ;;  %1540 = vpow2.f32 %v604_v52  ;;  %v681_v36 = vld [vmem:[#allocation6 + $0x18] sm:$0xff] }
 0x296   :  { %753 = vrot.lane.b32.xlu1 %v1901_v32, %s1596_s3  ;;  %800 = vrot.lane.b32.xlu0 %v1894_v13, %s1597_s13  ;;  %v557_v37 = vmul.f32 %v1385_v51, %v1922_v56 }
 0x297   :  { %v1537_v11 = vpop.eup %1536  ;;  %v618_v46 = vsub.f32 1.0, %v610_v7  ;;  %v571_v23 = vmul.f32 %v563_v58, %v1909_v30  ;;  %v1135_v7 = vld [vmem:[%s2482_s7 + $0x8] sm:$0xff] }
 0x298   :  { %v612_v2 = vmul.f32 %v1537_v11, %v572_v15  ;;  %v565_v62 = vadd.f32 0.2548296, %v557_v37  ;;  %v1136_v15 = vld [vmem:[%s2482_s7 + $0x10] sm:$0xff] }
 0x299   :  { %v626_v28 = vmul.f32 %v618_v46, %v442_v0  ;;  %v680_v0 = vld [vmem:[#allocation6 + $0x10] sm:$0xff] }
 0x29a   :  { %802 = vrot.lane.b32.xlu1 %v1901_v32, %s1597_s13  ;;  %857 = vrot.lane.b32.xlu0 %v1894_v13, %s1598_s14  ;;  %v620_v49 = vsub.f32 1.0, %v612_v2  ;;  %v573_v5 = vmul.f32 %v565_v62, %v1922_v56 }
 0x29b   :  { %v642_v38 = vadd.f32 1.0, %v626_v28  ;;  %v679_v28 = vld [vmem:[#allocation6 + $0x8] sm:$0xff] }
 0x29c   :  { %v628_v55 = vmul.f32 %v620_v49, %v444_v26 }
 0x29d   :  { %v1986_v60 = vmul.f32 %v642_v38, %v634_v4  ;;  %v727_v4 = vld [vmem:[#allocation6 + $0x40] sm:$0xff] }
 0x29e   :  { %859 = vrot.lane.b32.xlu1 %v1901_v32, %s1598_s14  ;;  %905 = vrot.lane.b32.xlu0 %v1894_v13, %s1599_s0  ;;  %v644_v61 = vadd.f32 1.0, %v628_v55  ;;  %v1539_v33 = vpop.eup %1538 }
 0x29f   :  { %v611_v42 = vmul.f32 %v1539_v33, %v571_v23  ;;  %v1541_v30 = vpop.eup %1540 }
 0x2a0   :  { %v1994_v6 = vmul.f32 %v644_v61, %v636_v3  ;;  %v613_v16 = vmul.f32 %v1541_v30, %v573_v5  ;;  %v729_v61 = vld [vmem:[#allocation6 + $0x50] sm:$0xff] }
 0x2a1   :  { %v619_v34 = vsub.f32 1.0, %v611_v42 }
 0x2a2   :  { %907 = vrot.lane.b32.xlu1 %v1901_v32, %s1599_s0  ;;  %662 = vrot.lane.b32.xlu0 %v1945_v22, %s1595_s10  ;;  %v621_v14 = vsub.f32 1.0, %v613_v16  ;;  %v776_v16 = vld [vmem:[#allocation6 + $0x80] sm:$0xff] }
 0x2a3   :  { %v627_v56 = vmul.f32 %v619_v34, %v443_v45  ;;  %v777_v45 = vld [vmem:[#allocation6 + $0x88] sm:$0xff] }
 0x2a4   :  { %v629_v20 = vmul.f32 %v621_v14, %v445_v50  ;;  %v778_v50 = vld [vmem:[#allocation6 + $0x90] sm:$0xff] }
 0x2a5   :  { %v643_v19 = vadd.f32 1.0, %v627_v56 }
 0x2a6   :  { %664 = vrot.lane.b32.xlu1 %v1956_v41, %s1595_s10  ;;  %710 = vrot.lane.b32.xlu0 %v1945_v22, %s1592_s16  ;;  %v645_v25 = vadd.f32 1.0, %v629_v20 }
 0x2a7   :  { %v2018_v8 = vmul.f32 %v643_v19, %v635_v21  ;;  %v779_v19 = vld [vmem:[#allocation6 + $0x98] sm:$0xff] }
 0x2a8   :  { %v2025_v12 = vmul.f32 %v645_v25, %v637_v63 }
 0x2aa   :  { %712 = vrot.lane.b32.xlu1 %v1956_v41, %s1592_s16  ;;  %759 = vrot.lane.b32.xlu0 %v1945_v22, %s1596_s3 }
 0x2ae   :  { %761 = vrot.lane.b32.xlu1 %v1956_v41, %s1596_s3  ;;  %808 = vrot.lane.b32.xlu0 %v1945_v22, %s1597_s13 }
 0x2b2   :  { %810 = vrot.lane.b32.xlu1 %v1956_v41, %s1597_s13  ;;  %865 = vrot.lane.b32.xlu0 %v1945_v22, %s1598_s14 }
 0x2b6   :  { %867 = vrot.lane.b32.xlu1 %v1956_v41, %s1598_s14  ;;  %658 = vrot.lane.b32.xlu0 %v1986_v60, %s1595_s10 }
 0x2ba   :  { %660 = vrot.lane.b32.xlu1 %v1994_v6, %s1595_s10  ;;  %706 = vrot.lane.b32.xlu0 %v1986_v60, %s1592_s16 }
 0x2be   :  { %708 = vrot.lane.b32.xlu1 %v1994_v6, %s1592_s16  ;;  %755 = vrot.lane.b32.xlu0 %v1986_v60, %s1596_s3 }
 0x2c2   :  { %757 = vrot.lane.b32.xlu1 %v1994_v6, %s1596_s3  ;;  %804 = vrot.lane.b32.xlu0 %v1986_v60, %s1597_s13 }
 0x2c6   :  { %806 = vrot.lane.b32.xlu1 %v1994_v6, %s1597_s13  ;;  %861 = vrot.lane.b32.xlu0 %v1986_v60, %s1598_s14 }
 0x2ca   :  { %863 = vrot.lane.b32.xlu1 %v1994_v6, %s1598_s14  ;;  %666 = vrot.lane.b32.xlu0 %v2018_v8, %s1595_s10 }
 0x2ce   :  { %668 = vrot.lane.b32.xlu1 %v2025_v12, %s1595_s10  ;;  %913 = vrot.lane.b32.xlu0 %v1945_v22, %s1599_s0 }
 0x2d2   :  { %915 = vrot.lane.b32.xlu1 %v1956_v41, %s1599_s0  ;;  %714 = vrot.lane.b32.xlu0 %v2018_v8, %s1592_s16 }
 0x2d6   :  { %716 = vrot.lane.b32.xlu1 %v2025_v12, %s1592_s16  ;;  %763 = vrot.lane.b32.xlu0 %v2018_v8, %s1596_s3 }
 0x2da   :  { %911 = vrot.lane.b32.xlu1 %v1994_v6, %s1599_s0  ;;  %812 = vrot.lane.b32.xlu0 %v2018_v8, %s1597_s13 }
 0x2de   :  { %765 = vrot.lane.b32.xlu1 %v2025_v12, %s1596_s3  ;;  %869 = vrot.lane.b32.xlu0 %v2018_v8, %s1598_s14 }
 0x2e2   :  { %956 = vrot.lane.b32.xlu1 %v1901_v32, %s1600_s15  ;;  %909 = vrot.lane.b32.xlu0 %v1986_v60, %s1599_s0 }
 0x2e6   :  { %814 = vrot.lane.b32.xlu1 %v2025_v12, %s1597_s13  ;;  %917 = vrot.lane.b32.xlu0 %v2018_v8, %s1599_s0 }
 0x2ea   :  { %964 = vrot.lane.b32.xlu1 %v1956_v41, %s1600_s15  ;;  %954 = vrot.lane.b32.xlu0 %v1894_v13, %s1600_s15 }
 0x2ee   :  { %1004 = vrot.lane.b32.xlu1 %v1901_v32, %s1601_s19  ;;  %962 = vrot.lane.b32.xlu0 %v1945_v22, %s1600_s15 }
 0x2f2   :  { %1012 = vrot.lane.b32.xlu1 %v1956_v41, %s1601_s19  ;;  %1002 = vrot.lane.b32.xlu0 %v1894_v13, %s1601_s19 }
 0x2f6   :  { %871 = vrot.lane.b32.xlu1 %v2025_v12, %s1598_s14  ;;  %1010 = vrot.lane.b32.xlu0 %v1945_v22, %s1601_s19 }
 0x2fa   :  { %960 = vrot.lane.b32.xlu1 %v1994_v6, %s1600_s15  ;;  %958 = vrot.lane.b32.xlu0 %v1986_v60, %s1600_s15 }
 0x2fc   :  { %v655_v40 = vpop.permute.xlu0 %654 }
 0x2fe   :  { %919 = vrot.lane.b32.xlu1 %v2025_v12, %s1599_s0  ;;  %966 = vrot.lane.b32.xlu0 %v2018_v8, %s1600_s15 }
 0x300   :  { %v657_v59 = vpop.permute.xlu1 %656  ;;  %v2079_v53 = vpop.permute.xlu0 %702 }
 0x302   :  { %1008 = vrot.lane.b32.xlu1 %v1994_v6, %s1601_s19  ;;  %1006 = vrot.lane.b32.xlu0 %v1986_v60, %s1601_s19 }
 0x304   :  { %v2088_v47 = vpop.permute.xlu1 %704  ;;  %v752_v10 = vpop.permute.xlu0 %751 }
 0x306   :  { %968 = vrot.lane.b32.xlu1 %v2025_v12, %s1600_s15  ;;  %1014 = vrot.lane.b32.xlu0 %v2018_v8, %s1601_s19 }
 0x308   :  { %v754_v35 = vpop.permute.xlu1 %753  ;;  %v801_v39 = vpop.permute.xlu0 %800 }
 0x30a   :  { %1016 = vrot.lane.b32.xlu1 %v2025_v12, %s1601_s19  ;;  %1140 = vperm.xlu0 %1500, %v1134_v1  }
 0x30c   :  { %v2105_v57 = vpop.permute.xlu1 %802  ;;  %v2107_v43 = vpop.permute.xlu0 %857 }
 0x30e   :  { %1145 = vperm.xlu1 %1501, %v1135_v7   ;;  %1150 = vperm.xlu0 %1500, %v1136_v15   ;;  %v825_v7 = vld [vmem:[#allocation6 + $0xc0] sm:$0xff]  ;;  %v826_v15 = vld [vmem:[#allocation6 + $0xc8] sm:$0xff] }
 0x310   :  { %v2112_v11 = vpop.permute.xlu1 %859  ;;  %v2114_v46 = vpop.permute.xlu0 %905 }
 0x312   :  { %1155 = vperm.xlu1 %1501, %v1137_v44  }
 0x314   :  { %v2116_v17 = vpop.permute.xlu1 %907  ;;  %v663_v2 = vpop.permute.xlu0 %662 }
 0x315   :  { %v670_v18 = vsel %vm70_vm0, %v655_v40, %v663_v2  ;;  %v674_v48 = vsel %vm70_vm0, %v663_v2, %v655_v40 }
 0x316   :  { %v686_v38 = vmul.f32 %v678_v54, %v674_v48  ;;  %v687_v55 = vmul.f32 %v679_v28, %v670_v18  ;;  %v827_v54 = vld [vmem:[#allocation6 + $0xd0] sm:$0xff]  ;;  %v828_v18 = vld [vmem:[#allocation6 + $0xd8] sm:$0xff] }
 0x318   :  { %v665_v49 = vpop.permute.xlu1 %664  ;;  %v2122_v51 = vpop.permute.xlu0 %710 }
 0x319   :  { %v671_v52 = vsel %vm70_vm0, %v657_v59, %v665_v49  ;;  %v675_v26 = vsel %vm70_vm0, %v665_v49, %v657_v59  ;;  %v722_v23 = vsel %vm83_vm1, %v2122_v51, %v2079_v53 }
 0x31a   :  { %v688_v58 = vmul.f32 %v680_v0, %v675_v26  ;;  %v689_v37 = vmul.f32 %v681_v36, %v671_v52  ;;  %v2138_v30 = vmul.f32 %v727_v4, %v722_v23  ;;  %v884_v4 = vld [vmem:[#allocation6 + $0x158] sm:$0xff] }
 0x31c   :  { %v2132_v62 = vpop.permute.xlu1 %712  ;;  %v760_v3 = vpop.permute.xlu0 %759  ;;  %v1398_v33 = vpack.c.bf16 %v689_v37, %v687_v55  ;;  %v1400_v42 = vpack.c.bf16 %v688_v58, %v686_v38  ;;  %v883_v37 = vld [vmem:[#allocation6 + $0x150] sm:$0xff] }
 0x31d   :  { %v723_v5 = vsel %vm83_vm1, %v2132_v62, %v2088_v47  ;;  %v767_v56 = vsel %vm97_vm2, %v752_v10, %v760_v3  ;;  %v771_v14 = vsel %vm97_vm2, %v760_v3, %v752_v10 }
 0x31e   :  { %v2140_v34 = vmul.f32 %v729_v61, %v723_v5  ;;  %1399 = vmatprep.subr.bf16.mxu1 %v1398_v33  ;;  %v2152_v59 = vmul.f32 %v776_v16, %v771_v14  ;;  %v2154_v27 = vmul.f32 %v777_v45, %v767_v56 }
 0x31f   :  { %1401 = vmatpush1.bf16.msra.mxu1 %v1400_v42 }
 0x320   :  { %v762_v20 = vpop.permute.xlu1 %761  ;;  %v809_v21 = vpop.permute.xlu0 %808  ;;  %v1408_v25 = vpack.c.bf16 %v2140_v34, %v2138_v30  ;;  %v783_v30 = vld [vmem:[#allocation6 + $0xb8] sm:$0xff] }
 0x321   :  { %v768_v63 = vsel %vm97_vm2, %v754_v35, %v762_v20  ;;  %v772_v40 = vsel %vm97_vm2, %v762_v20, %v754_v35  ;;  %v816_v44 = vsel %vm111_vm3, %v801_v39, %v809_v21  ;;  %v820_v2 = vsel %vm111_vm3, %v809_v21, %v801_v39 }
 0x322   :  { %v2156_v1 = vmul.f32 %v778_v50, %v772_v40  ;;  %v2158_v10 = vmul.f32 %v779_v19, %v768_v63  ;;  %v2177_v52 = vmul.f32 %v825_v7, %v820_v2  ;;  %v2179_v26 = vmul.f32 %v826_v15, %v816_v44  ;;  %v730_v15 = vld [vmem:[#allocation6 + $0x58] sm:$0xff]  ;;  %v682_v2 = vld [vmem:[#allocation6 + $0x20] sm:$0xff]  ;;  %v931_v19 = vld [vmem:[#allocation6 + $0x188] sm:$0xff] }
 0x323   :  { %v719_v44 = vsel %vm83_vm1, %v2088_v47, %v2132_v62 }
 0x324   :  { %v811_v48 = vpop.permute.xlu1 %810  ;;  %v866_v35 = vpop.permute.xlu0 %865  ;;  %v1414_v0 = vpack.c.bf16 %v2158_v10, %v2154_v27  ;;  %v1416_v28 = vpack.c.bf16 %v2156_v1, %v2152_v59  ;;  %v831_v59 = vld [vmem:[#allocation6 + $0xf0] sm:$0xff]  ;;  %v832_v1 = vld [vmem:[#allocation6 + $0xf8] sm:$0xff] }
 0x325   :  { %v817_v36 = vsel %vm111_vm3, %v2105_v57, %v811_v48  ;;  %v821_v49 = vsel %vm111_vm3, %v811_v48, %v2105_v57  ;;  %v873_v39 = vsel %vm125_vm4, %v2107_v43, %v866_v35  ;;  %v877_v55 = vsel %vm125_vm4, %v866_v35, %v2107_v43  ;;  %v684_v35 = vld [vmem:[#allocation6 + $0x30] sm:$0xff] }
 0x326   :  { %v2181_v38 = vmul.f32 %v827_v54, %v821_v49  ;;  %v2183_v58 = vmul.f32 %v828_v18, %v817_v36  ;;  %v2199_v43 = vmul.f32 %v873_v39, %v1763_v29  ;;  %v2202_v5 = vmul.f32 %v877_v55, %v1765_v31  ;;  %v683_v54 = vld [vmem:[#allocation6 + $0x28] sm:$0xff]  ;;  %v685_v36 = vld [vmem:[#allocation6 + $0x38] sm:$0xff] }
 0x327   :  { %v728_v49 = vld [vmem:[#allocation6 + $0x48] sm:$0xff]  ;;  %v718_v39 = vsel %vm83_vm1, %v2079_v53, %v2122_v51 }
 0x328   :  { %v868_v23 = vpop.permute.xlu1 %867  ;;  %v659_v57 = vpop.permute.xlu0 %658  ;;  %v1422_v61 = vpack.c.bf16 %v2183_v58, %v2179_v26  ;;  %v736_v24 = vmul.f32 %v728_v49, %v718_v39  ;;  %v731_v39 = vld [vmem:[#allocation6 + $0x60] sm:$0xff] }
 0x329   :  { %v874_v33 = vsel %vm125_vm4, %v2112_v11, %v868_v23  ;;  %v878_v42 = vsel %vm125_vm4, %v868_v23, %v2112_v11 }
 0x32a   :  { %v2204_v16 = vmul.f32 %v883_v37, %v874_v33  ;;  %v2206_v45 = vmul.f32 %v884_v4, %v878_v42  ;;  %v738_v4 = vmul.f32 %v730_v15, %v719_v44  ;;  %v932_v15 = vld [vmem:[#allocation6 + $0x190] sm:$0xff]  ;;  %v933_v44 = vld [vmem:[#allocation6 + $0x198] sm:$0xff] }
 0x32c   :  { %v661_v56 = vpop.permute.xlu1 %660  ;;  %v707_v14 = vpop.permute.xlu0 %706 }
 0x330   :  { %v709_v20 = vpop.permute.xlu1 %708  ;;  %v2212_v11 = vpop.permute.xlu0 %755 }
 0x334   :  { %v2214_v29 = vpop.permute.xlu1 %757  ;;  %v2216_v21 = vpop.permute.xlu0 %804 }
 0x338   :  { %v2218_v31 = vpop.permute.xlu1 %806  ;;  %v2220_v63 = vpop.permute.xlu0 %861 }
 0x33c   :  { %v2222_v40 = vpop.permute.xlu1 %863  ;;  %v667_v7 = vpop.permute.xlu0 %666 }
 0x33d   :  { %v672_v18 = vsel %vm70_vm0, %v659_v57, %v667_v7  ;;  %v676_v48 = vsel %vm70_vm0, %v667_v7, %v659_v57  ;;  %v930_v7 = vld [vmem:[#allocation6 + $0x180] sm:$0xff] }
 0x33e   :  { %v690_v23 = vmul.f32 %v682_v2, %v676_v48  ;;  %v691_v33 = vmul.f32 %v683_v54, %v672_v18  ;;  %v1406_v48 = vpack.c.bf16 %v738_v4, %v736_v24  ;;  %v734_v24 = vld [vmem:[#allocation6 + $0x78] sm:$0xff] }
 0x340   :  { %v669_v55 = vpop.permute.xlu1 %668  ;;  %v914_v37 = vpop.permute.xlu0 %913 }
 0x341   :  { %v673_v47 = vsel %vm70_vm0, %v661_v56, %v669_v55  ;;  %v677_v62 = vsel %vm70_vm0, %v669_v55, %v661_v56  ;;  %v921_v53 = vsel %vm139_vm5, %v2114_v46, %v914_v37  ;;  %v925_v51 = vsel %vm139_vm5, %v914_v37, %v2114_v46  ;;  %v732_v55 = vld [vmem:[#allocation6 + $0x68] sm:$0xff] }
 0x342   :  { %v692_v57 = vmul.f32 %v684_v35, %v677_v62  ;;  %v693_v42 = vmul.f32 %v685_v36, %v673_v47  ;;  %v2252_v35 = vmul.f32 %v930_v7, %v921_v53  ;;  %v2254_v36 = vmul.f32 %v931_v19, %v925_v51 }
 0x344   :  { %v916_v50 = vpop.permute.xlu1 %915  ;;  %v715_v3 = vpop.permute.xlu0 %714  ;;  %v1402_v56 = vpack.c.bf16 %v693_v42, %v691_v33  ;;  %v1404_v2 = vpack.c.bf16 %v692_v57, %v690_v23 }
 0x345   :  { %v922_v54 = vsel %vm139_vm5, %v2116_v17, %v916_v50  ;;  %v926_v18 = vsel %vm139_vm5, %v916_v50, %v2116_v17  ;;  %v720_v37 = vsel %vm83_vm1, %v707_v14, %v715_v3  ;;  %v724_v47 = vsel %vm83_vm1, %v715_v3, %v707_v14  ;;  %v733_v17 = vld [vmem:[#allocation6 + $0x70] sm:$0xff] }
 0x346   :  { %v2256_v46 = vmul.f32 %v932_v15, %v922_v54  ;;  %v2258_v49 = vmul.f32 %v933_v44, %v926_v18  ;;  %1403 = vmatprep.subr.bf16.mxu1 %v1402_v56  ;;  %v739_v57 = vmul.f32 %v731_v39, %v724_v47  ;;  %v740_v3 = vmul.f32 %v732_v55, %v720_v37  ;;  %v780_v44 = vld [vmem:[#allocation6 + $0xa0] sm:$0xff]  ;;  %v781_v56 = vld [vmem:[#allocation6 + $0xa8] sm:$0xff]  ;;  %v782_v54 = vld [vmem:[#allocation6 + $0xb0] sm:$0xff] }
 0x347   :  { %1405 = vmatpush1.bf16.msra.mxu1 %v1404_v2 }
 0x348   :  { %v717_v50 = vpop.permute.xlu1 %716  ;;  %1407 = vmatprep.subr.bf16.mxu1 %v1406_v48  ;;  %v764_v19 = vpop.permute.xlu0 %763  ;;  %v1446_v4 = vpack.c.bf16 %v2258_v49, %v2254_v36  ;;  %v1448_v62 = vpack.c.bf16 %v2256_v46, %v2252_v35 }
 0x349   :  { %v721_v23 = vsel %vm83_vm1, %v709_v20, %v717_v50  ;;  %v725_v33 = vsel %vm83_vm1, %v717_v50, %v709_v20  ;;  %v769_v20 = vsel %vm97_vm2, %v2212_v11, %v764_v19  ;;  %v773_v2 = vsel %vm97_vm2, %v764_v19, %v2212_v11 }
 0x34a   :  { %v741_v14 = vmul.f32 %v733_v17, %v725_v33  ;;  %v742_v42 = vmul.f32 %v734_v24, %v721_v23  ;;  %v788_v39 = vmul.f32 %v780_v44, %v773_v2  ;;  %v789_v55 = vmul.f32 %v781_v56, %v769_v20  ;;  %v829_v17 = vld [vmem:[#allocation6 + $0xe0] sm:$0xff]  ;;  %v830_v24 = vld [vmem:[#allocation6 + $0xe8] sm:$0xff] }
 0x34b   :  { %1409 = vmatpush1.bf16.msra.mxu1 %v1408_v25  ;;  %v1432_v44 = vpack.c.bf16 %v1901_v32, %v1894_v13  ;;  %v1436_v2 = vpack.c.bf16 %v1994_v6, %v1986_v60  ;;  %v1028_v32 = vld [vmem:[#allocation6 + $0x210] sm:$0xff]  ;;  %v888_v60 = vld [vmem:[#allocation6 + $0x178] sm:$0xff]  ;;  %v1026_v6 = vld [vmem:[#allocation6 + $0x200] sm:$0xff] }
 0x34c   :  { %v2275_v7 = vpop.permute.xlu1 %911  ;;  %v813_v53 = vpop.permute.xlu0 %812  ;;  %v1410_v51 = vpack.c.bf16 %v742_v42, %v740_v3  ;;  %v1412_v15 = vpack.c.bf16 %v741_v14, %v739_v57  ;;  %v2486_v42 = vpack.c.bf16 %v2181_v38, %v2177_v52  ;;  %v1434_v52 = vpack.c.bf16 %v2025_v12, %v2018_v8  ;;  %v885_v38 = vld [vmem:[#allocation6 + $0x160] sm:$0xff] }
 0x34d   :  { %v822_v50 = vsel %vm111_vm3, %v813_v53, %v2216_v21 }
 0x34e   :  { %1411 = vmatprep.subr.bf16.mxu1 %v1410_v51  ;;  %v837_v57 = vmul.f32 %v829_v17, %v822_v50  ;;  %v1430_v51 = vpack.c.bf16 %v1956_v41, %v1945_v22  ;;  %v886_v22 = vld [vmem:[#allocation6 + $0x168] sm:$0xff] }
 0x34f   :  { %1413 = vmatpush1.bf16.msra.mxu1 %v1412_v15 }
 0x350   :  { %v766_v34 = vpop.permute.xlu1 %765  ;;  %1415 = vmatprep.subr.bf16.mxu1 %v1414_v0  ;;  %v870_v25 = vpop.permute.xlu0 %869 }
 0x351   :  { %v770_v18 = vsel %vm97_vm2, %v2214_v29, %v766_v34  ;;  %v774_v48 = vsel %vm97_vm2, %v766_v34, %v2214_v29  ;;  %v818_v29 = vsel %vm111_vm3, %v2216_v21, %v813_v53  ;;  %v875_v41 = vsel %vm125_vm4, %v2220_v63, %v870_v25  ;;  %v1027_v34 = vld [vmem:[#allocation6 + $0x208] sm:$0xff] }
 0x352   :  { %v790_v11 = vmul.f32 %v782_v54, %v774_v48  ;;  %v791_v37 = vmul.f32 %v783_v30, %v770_v18  ;;  %v838_v21 = vmul.f32 %v830_v24, %v818_v29  ;;  %v879_v13 = vsel %vm125_vm4, %v870_v25, %v2220_v63  ;;  %v1029_v54 = vld [vmem:[#allocation6 + $0x218] sm:$0xff]  ;;  %v887_v30 = vld [vmem:[#allocation6 + $0x170] sm:$0xff] }
 0x353   :  { %1417 = vmatpush1.bf16.msra.mxu1 %v1416_v28  ;;  %v893_v18 = vmul.f32 %v885_v38, %v875_v41  ;;  %v894_v48 = vmul.f32 %v886_v22, %v879_v13  ;;  %v2487_v63 = vpack.c.bf16 %v2206_v45, %v2202_v5  ;;  %v2488_v45 = vpack.c.bf16 %v2204_v16, %v2199_v43  ;;  %v979_v43 = vld [vmem:[#allocation6 + $0x1c8] sm:$0xff] }
 0x354   :  { %v2295_v47 = vpop.permute.xlu1 %956  ;;  %v2297_v27 = vpop.permute.xlu0 %909  ;;  %v1418_v10 = vpack.c.bf16 %v791_v37, %v789_v55  ;;  %v1420_v0 = vpack.c.bf16 %v790_v11, %v788_v39 }
 0x356   :  { %1419 = vmatprep.subr.bf16.mxu1 %v1418_v10 }
 0x357   :  { %1421 = vmatpush1.bf16.msra.mxu1 %v1420_v0 }
 0x358   :  { %v815_v28 = vpop.permute.xlu1 %814  ;;  %1423 = vmatprep.subr.bf16.mxu1 %v1422_v61  ;;  %v2308_v19 = vpop.permute.xlu0 %917 }
 0x359   :  { %v819_v23 = vsel %vm111_vm3, %v2218_v31, %v815_v28  ;;  %v823_v33 = vsel %vm111_vm3, %v815_v28, %v2218_v31 }
 0x35a   :  { %v839_v3 = vmul.f32 %v831_v59, %v823_v33  ;;  %v840_v14 = vmul.f32 %v832_v1, %v819_v23 }
 0x35b   :  { %1425 = vmatpush1.bf16.msra.mxu1 %v2486_v42  ;;  %v936_v42 = vld [vmem:[#allocation6 + $0x1b0] sm:$0xff] }
 0x35c   :  { %v2319_v26 = vpop.permute.xlu1 %964  ;;  %v2321_v58 = vpop.permute.xlu0 %954  ;;  %v1426_v61 = vpack.c.bf16 %v840_v14, %v838_v21  ;;  %v1428_v53 = vpack.c.bf16 %v839_v3, %v837_v57  ;;  %v934_v57 = vld [vmem:[#allocation6 + $0x1a0] sm:$0xff]  ;;  %v923_v21 = vsel %vm139_vm5, %v2297_v27, %v2308_v19  ;;  %v935_v3 = vld [vmem:[#allocation6 + $0x1a8] sm:$0xff]  ;;  %v927_v14 = vsel %vm139_vm5, %v2308_v19, %v2297_v27  ;;  %v981_v19 = vld [vmem:[#allocation6 + $0x1d8] sm:$0xff] }
 0x35d   :  { %v943_v27 = vmul.f32 %v935_v3, %v927_v14  ;;  %v971_v22 = vsel %vm153_vm6, %v2295_v47, %v2319_v26  ;;  %v1052_v3 = vld [vmem:[%s2481_s6 + $0x10] sm:$0xff]  ;;  %v1057_v14 = vld [vmem:[%s2481_s6 + $0x38] sm:$0xff] }
 0x35e   :  { %1427 = vmatprep.subr.bf16.mxu1 %v1426_v61  ;;  %v937_v61 = vld [vmem:[#allocation6 + $0x1b8] sm:$0xff] }
 0x35f   :  { %1429 = vmatpush1.bf16.msra.mxu1 %v1428_v53  ;;  %v942_v53 = vmul.f32 %v934_v57, %v923_v21  ;;  %v1054_v21 = vld [vmem:[%s2481_s6 + $0x20] sm:$0xff] }
 0x360   :  { %v1005_v31 = vpop.permute.xlu1 %1004  ;;  %1431 = vmatprep.subr.bf16.mxu1 %v1430_v51  ;;  %v2325_v15 = vpop.permute.xlu0 %962 }
 0x361   :  { %v974_v16 = vsel %vm153_vm6, %v2325_v15, %v2321_v58  ;;  %v970_v36 = vsel %vm153_vm6, %v2321_v58, %v2325_v15  ;;  %v982_v58 = vld [vmem:[#allocation6 + $0x1e0] sm:$0xff] }
 0x362   :  { %v987_v49 = vmul.f32 %v979_v43, %v974_v16  ;;  %v2489_v43 = vmov 0.0   ;;  %v1056_v16 = vld [vmem:[%s2481_s6 + $0x30] sm:$0xff] }
 0x363   :  { %1433 = vmatpush1.bf16.msra.mxu1 %v1432_v44  ;;  %v975_v44 = vsel %vm153_vm6, %v2319_v26, %v2295_v47  ;;  %v985_v47 = vld [vmem:[#allocation6 + $0x1f8] sm:$0xff] }
 0x364   :  { %v1013_v56 = vpop.permute.xlu1 %1012  ;;  %1435 = vmatprep.subr.bf16.mxu1 %v1434_v52  ;;  %v1003_v20 = vpop.permute.xlu0 %1002 }
 0x365   :  { %v1019_v8 = vsel %vm167_vm7, %v1005_v31, %v1013_v56  ;;  %v1023_v12 = vsel %vm167_vm7, %v1013_v56, %v1005_v31  ;;  %v978_v56 = vld [vmem:[#allocation6 + $0x1c0] sm:$0xff] }
 0x366   :  { %v1036_v39 = vmul.f32 %v1028_v32, %v1019_v8  ;;  %v1037_v55 = vmul.f32 %v1029_v54, %v1023_v12  ;;  %v986_v8 = vmul.f32 %v978_v56, %v970_v36 }
 0x367   :  { %1437 = vmatpush1.bf16.msra.mxu1 %v1436_v2  ;;  %v980_v2 = vld [vmem:[#allocation6 + $0x1d0] sm:$0xff] }
 0x368   :  { %v872_v11 = vpop.permute.xlu1 %871  ;;  %1439 = vmatprep.subr.bf16.mxu1 %v2487_v63  ;;  %v1011_v25 = vpop.permute.xlu0 %1010  ;;  %v988_v12 = vmul.f32 %v980_v2, %v971_v22  ;;  %v1030_v63 = vld [vmem:[#allocation6 + $0x220] sm:$0xff] }
 0x369   :  { %v876_v37 = vsel %vm125_vm4, %v2222_v40, %v872_v11  ;;  %v880_v10 = vsel %vm125_vm4, %v872_v11, %v2222_v40  ;;  %v1018_v0 = vsel %vm167_vm7, %v1003_v20, %v1011_v25  ;;  %v1022_v17 = vsel %vm167_vm7, %v1011_v25, %v1003_v20  ;;  %v1031_v25 = vld [vmem:[#allocation6 + $0x228] sm:$0xff] }
 0x36a   :  { %v895_v24 = vmul.f32 %v887_v30, %v876_v37  ;;  %v896_v29 = vmul.f32 %v888_v60, %v880_v10  ;;  %v1034_v50 = vmul.f32 %v1026_v6, %v1018_v0  ;;  %v1035_v5 = vmul.f32 %v1027_v34, %v1022_v17  ;;  %v983_v30 = vld [vmem:[#allocation6 + $0x1e8] sm:$0xff]  ;;  %v1032_v0 = vld [vmem:[#allocation6 + $0x230] sm:$0xff]  ;;  %v1033_v17 = vld [vmem:[#allocation6 + $0x238] sm:$0xff] }
 0x36b   :  { %1441 = vmatpush1.bf16.msra.mxu1 %v2488_v45 }
 0x36c   :  { %v1464_v59 = vpack.c.bf16 %v1036_v39, %v1034_v50  ;;  %v961_v1 = vpop.permute.xlu1 %960  ;;  %v959_v28 = vpop.permute.xlu0 %958  ;;  %v1442_v23 = vpack.c.bf16 %v896_v29, %v894_v48  ;;  %v1462_v33 = vpack.c.bf16 %v1037_v55, %v1035_v5  ;;  %v1444_v40 = vpack.c.bf16 %v895_v24, %v893_v18 }
 0x36d   :  { %v1456_v18 = vpack.c.bf16 %v988_v12, %v986_v8 }
 0x36e   :  { %1443 = vmatprep.subr.bf16.mxu1 %v1442_v23  ;;  %1463 = vmatprep.subr.bf16.mxu0 %v1462_v33  ;;  %v1050_v33 = vld [vmem:[%s2481_s6] sm:$0xff] }
 0x36f   :  { %1445 = vmatpush1.bf16.msra.mxu1 %v1444_v40  ;;  %1465 = vmatpush1.bf16.msra.mxu0 %v1464_v59 }
 0x370   :  { %v920_v51 = vpop.permute.xlu1 %919  ;;  %1447 = vmatprep.subr.bf16.mxu1 %v1446_v4  ;;  %v967_v31 = vpop.permute.xlu0 %966 }
 0x371   :  { %v924_v52 = vsel %vm139_vm5, %v2275_v7, %v920_v51  ;;  %v928_v38 = vsel %vm139_vm5, %v920_v51, %v2275_v7  ;;  %v989_v7 = vmul.f32 %v981_v19, %v975_v44  ;;  %v972_v35 = vsel %vm153_vm6, %v959_v28, %v967_v31  ;;  %v1058_v51 = vld [vmem:[%s2481_s6 + $0x40] sm:$0xff] }
 0x372   :  { %v944_v4 = vmul.f32 %v936_v42, %v924_v52  ;;  %v945_v20 = vmul.f32 %v937_v61, %v928_v38  ;;  %v976_v46 = vsel %vm153_vm6, %v967_v31, %v959_v28  ;;  %v990_v48 = vmul.f32 %v982_v58, %v972_v35  ;;  %v1055_v42 = vld [vmem:[%s2481_s6 + $0x28] sm:$0xff]  ;;  %v1060_v61 = vld [vmem:[%s2481_s6 + $0x50] sm:$0xff]  ;;  %v1061_v31 = vld [vmem:[%s2481_s6 + $0x58] sm:$0xff] }
 0x373   :  { %1449 = vmatpush1.bf16.msra.mxu1 %v1448_v62  ;;  %v1454_v15 = vpack.c.bf16 %v989_v7, %v987_v49  ;;  %v984_v62 = vld [vmem:[#allocation6 + $0x1f0] sm:$0xff]  ;;  %v991_v39 = vmul.f32 %v983_v30, %v976_v46 }
 0x374   :  { %v1009_v41 = vpop.permute.xlu1 %1008  ;;  %v1007_v13 = vpop.permute.xlu0 %1006  ;;  %v1450_v32 = vpack.c.bf16 %v945_v20, %v943_v27  ;;  %v1452_v54 = vpack.c.bf16 %v944_v4, %v942_v53  ;;  %v1059_v53 = vld [vmem:[%s2481_s6 + $0x48] sm:$0xff] }
 0x376   :  { %1451 = vmatprep.subr.bf16.mxu1 %v1450_v32 }
 0x377   :  { %1453 = vmatpush1.bf16.msra.mxu1 %v1452_v54 }
 0x378   :  { %v969_v26 = vpop.permute.xlu1 %968  ;;  %1455 = vmatprep.subr.bf16.mxu1 %v1454_v15  ;;  %v1015_v60 = vpop.permute.xlu0 %1014 }
 0x379   :  { %v973_v6 = vsel %vm153_vm6, %v961_v1, %v969_v26  ;;  %v977_v34 = vsel %vm153_vm6, %v969_v26, %v961_v1  ;;  %v1020_v37 = vsel %vm167_vm7, %v1007_v13, %v1015_v60  ;;  %v1024_v10 = vsel %vm167_vm7, %v1015_v60, %v1007_v13 }
 0x37a   :  { %v992_v55 = vmul.f32 %v984_v62, %v973_v6  ;;  %v993_v11 = vmul.f32 %v985_v47, %v977_v34  ;;  %v1038_v59 = vmul.f32 %v1030_v63, %v1020_v37  ;;  %v1039_v1 = vmul.f32 %v1031_v25, %v1024_v10 }
 0x37b   :  { %1457 = vmatpush1.bf16.msra.mxu1 %v1456_v18 }
 0x37c   :  { %v1017_v24 = vpop.permute.xlu1 %1016  ;;  %v1458_v29 = vpack.c.bf16 %v993_v11, %v991_v39  ;;  %v1460_v50 = vpack.c.bf16 %v992_v55, %v990_v48 }
 0x37d   :  { %v1021_v5 = vsel %vm167_vm7, %v1009_v41, %v1017_v24  ;;  %v1025_v45 = vsel %vm167_vm7, %v1017_v24, %v1009_v41 }
 0x37e   :  { %v1040_v28 = vmul.f32 %v1032_v0, %v1021_v5  ;;  %v1041_v23 = vmul.f32 %v1033_v17, %v1025_v45  ;;  %1459 = vmatprep.subr.bf16.mxu1 %v1458_v29 }
 0x37f   :  { %1461 = vmatpush1.bf16.msra.mxu1 %v1460_v50 }
 0x380   :  { %v1468_v40 = vpack.c.bf16 %v1040_v28, %v1038_v59  ;;  %v1466_v57 = vpack.c.bf16 %v1041_v23, %v1039_v1 }
 0x382   :  { %1235 = vmatmul.mubr.f32.vlgmr.msra.gmra.mrb[0].mxu1 %v1050_v33  ;;  %1467 = vmatprep.subr.bf16.mxu0 %v1466_v57 }
 0x383   :  { %1469 = vmatpush1.bf16.msra.mxu0 %v1468_v40  ;;  %1240 = vmatprep.mubr.f32.mxu1 %v1054_v21 }
 0x386   :  { %1241 = vmatmul.mubr.f32.gmra.mrb[2].mxu1 %v1053_v9  ;;  %1386 = vmatmul.mubr.msk.f32.vlgmr.msra.gmra.mrb[8].mxu0 %vm320_vm10, %v1052_v3 }
 0x387   :  { %1246 = vmatprep.mubr.f32.mxu1 %v1057_v14  ;;  %1329 = vmatprep.mubr.f32.mxu0 %v2489_v43 }
 0x389   :  { %v1141_v44 = vpop.permute.xlu0 %1140 }
 0x38a   :  { %1247 = vmatmul.mubr.f32.gmra.mrb[4].mxu1 %v1056_v16  ;;  %1387 = vmatmul.mubr.msk.f32.gmra.mrb[10].mxu0 %vm320_vm10, %v1055_v42 }
 0x38b   :  { %1252 = vmatprep.mubr.f32.mxu1 %v1060_v61  ;;  %1335 = vmatprep.mubr.f32.mxu0 %v2489_v43 }
 0x38d   :  { %v1146_v2 = vpop.permute.xlu1 %1145  ;;  %v1151_v15 = vpop.permute.xlu0 %1150 }
 0x38e   :  { %1253 = vmatmul.mubr.f32.gmra.mrb[6].mxu1 %v1059_v53  ;;  %1388 = vmatmul.mubr.msk.f32.gmra.mrb[12].mxu0 %vm320_vm10, %v1058_v51 }
 0x38f   :  { %1341 = vmatprep.mubr.f32.mxu0 %v2489_v43 }
 0x391   :  { %v1156_v6 = vpop.permute.xlu1 %1155 }
 0x392   :  { %1389 = vmatmul.mubr.msk.f32.gmra.mrb[14].mxu0 %vm320_vm10, %v1061_v31 }
 0x455   :  { %v1236_v27 = vpop.f32.mrb[0].mxu1 }
 0x456   :  { %v1238_v19 = vpop.f32.mrb[1].mxu1  ;;  %v1237_v52 = vadd.f32 %v1236_v27, %v1141_v44 }
 0x457   :  { %v1239_v38 = vadd.f32 %v1238_v19, %v1141_v44 }
 0x459   :  { %v1242_v56 = vpop.f32.mrb[2].mxu1  ;;  %v1325_v36 = vpop.f32.mrb[8].mxu0 }
 0x45a   :  { %v1326_v49 = vadd.f32 %v1325_v36, %v1237_v52  ;;  %v1244_v4 = vpop.f32.mrb[3].mxu1  ;;  %v1327_v20 = vpop.f32.mrb[9].mxu0  ;;  %v1243_v7 = vadd.f32 %v1242_v56, %v1146_v2 }
 0x45b   :  { %v1328_v22 = vadd.f32 %v1327_v20, %v1239_v38  ;;  %v1245_v41 = vadd.f32 %v1244_v4, %v1146_v2 }
 0x45c   :  { %1348 = vst [vmem:[%s2483_s8] sm:$0xff] %v1326_v49 }
 0x45d   :  { %1349 = vst [vmem:[%s2483_s8 + $0x8] sm:$0xff] %v1328_v22  ;;  %v1248_v13 = vpop.f32.mrb[4].mxu1  ;;  %v1331_v32 = vpop.f32.mrb[10].mxu0 }
 0x45e   :  { %v1332_v54 = vadd.f32 %v1331_v32, %v1243_v7  ;;  %v1250_v8 = vpop.f32.mrb[5].mxu1  ;;  %v1333_v58 = vpop.f32.mrb[11].mxu0  ;;  %v1249_v30 = vadd.f32 %v1248_v13, %v1151_v15 }
 0x45f   :  { %v1334_v12 = vadd.f32 %v1333_v58, %v1245_v41  ;;  %v1251_v35 = vadd.f32 %v1250_v8, %v1151_v15 }
 0x460   :  { %1350 = vst [vmem:[%s2483_s8 + $0x10] sm:$0xff] %v1332_v54 }
 0x461   :  { %1351 = vst [vmem:[%s2483_s8 + $0x18] sm:$0xff] %v1334_v12  ;;  %v1254_v46 = vpop.f32.mrb[6].mxu1  ;;  %v1337_v62 = vpop.f32.mrb[12].mxu0 }
 0x462   :  { %v1338_v47 = vadd.f32 %v1337_v62, %v1249_v30  ;;  %v1256_v26 = vpop.f32.mrb[7].mxu1  ;;  %v1339_v60 = vpop.f32.mrb[13].mxu0  ;;  %v1255_v18 = vadd.f32 %v1254_v46, %v1156_v6 }
 0x463   :  { %v1340_v34 = vadd.f32 %v1339_v60, %v1251_v35  ;;  %v1257_v48 = vadd.f32 %v1256_v26, %v1156_v6 }
 0x464   :  { %1352 = vst [vmem:[%s2483_s8 + $0x20] sm:$0xff] %v1338_v47 }
 0x465   :  { %1353 = vst [vmem:[%s2483_s8 + $0x28] sm:$0xff] %v1340_v34  ;;  %v1343_v39 = vpop.f32.mrb[14].mxu0 }
 0x466   :  { %v1344_v55 = vadd.f32 %v1343_v39, %v1255_v18  ;;  %v1345_v11 = vpop.f32.mrb[15].mxu0 }
 0x467   :  { %v1346_v63 = vadd.f32 %v1345_v11, %v1257_v48 }
 0x468   :  { %1354 = vst [vmem:[%s2483_s8 + $0x30] sm:$0xff] %v1344_v55 }
 0x469   :  { %1355 = vst [vmem:[%s2483_s8 + $0x38] sm:$0xff] %v1346_v63 }
 0x46a   :  { %1360 = vsyncpa [#allocation5], 1 }
 0x46b   :  { %1361 = vsyncpa [#allocation7], 1 }

</bundles_post_ra>
